<compile_context>
chip_gen: v7x
topology: tpu7x:2x2x1
jax: 0.10.0
libtpu: 0.0.40
codegen_flags: <defaults>
</compile_context>

<pallas_src>
import functools

import jax
import jax.numpy as jnp
import numpy as np
from jax import lax
from jax.experimental import pallas as pl
from jax.experimental.pallas import tpu as pltpu


def _round_up(v, m):
    return ((v + m - 1) // m) * m


def _relu(v):
    return jnp.maximum(v, 0.0)


def edgenet_emd_kernel(n_real, n_pad,
                       x_ref, a_ref, invc_ref, bn_ref, w1e_ref, w_ref, b_ref,
                       out_ref, y_ref):
    """Fused BatchNorm1d + EdgeConv encoder + EdgeConv decoder.

    Grid = (phase, edge_tile); phase 0 = encoder, phase 1 = decoder.

    a_ref   : [tE, 2*N_pad] bf16 tile of [Gcol | Grow - Gcol].
    invc_ref: [N_pad, 1] f32, 1 / max(in-degree, 1) (padded nodes -> 1).
    bn_ref  : [2, 1, 4]   (gamma; beta).
    w1e_ref : [2, 4, 32]  encoder first-layer node-side weights (x_i block; x_j - x_i block).
    w_ref   : [6, 32, 32] {enc_w2, enc_w3(pad), dec_w2, dec_w3(pad), dec_w1_i(pad), dec_w1_d(pad)}.
    b_ref   : [6, 1, 32]  biases {enc b1,b2,b3(pad), dec b1,b2,b3(pad)}.
    out_ref : [N_pad, 32] resident accumulator / lane-dense output slab.
    y_ref   : [2*N_pad, 32] persistent node-side first-layer projections.
    """
    f32 = jnp.float32
    dot = lambda a, b: jnp.dot(a, b, preferred_element_type=f32)

    p = pl.program_id(0)       # 0 = encoder pass, 1 = decoder pass
    i = pl.program_id(1)       # edge-tile index
    nt = pl.num_programs(1)

    # ---- very first step: BatchNorm1d (batch stats) + encoder node-side fold ----
    @pl.when(jnp.logical_and(p == 0, i == 0))
    def _init():
        x = x_ref[...]                                           # [N_pad, 4]; pad rows are 0
        inv_n = 1.0 / float(n_real)
        mean = jnp.sum(x, axis=0, keepdims=True) * inv_n
        var = jnp.sum(x * x, axis=0, keepdims=True) * inv_n - mean * mean
        xn = (x - mean) * lax.rsqrt(var + 1e-5) * bn_ref[0] + bn_ref[1]
        y_ref[pl.ds(0, n_pad), :] = dot(xn, w1e_ref[0])          # x_i projection
        y_ref[pl.ds(n_pad, n_pad), :] = dot(xn, w1e_ref[1])      # (x_j - x_i) projection
        out_ref[...] = jnp.zeros_like(out_ref)

    # ---- per-tile gather: one MXU contraction gives the fused first-layer pre-activation ----
    a_t = a_ref[...].astype(f32)          # per-tile bf16 -> f32 (exact: entries are 0 / +-1)
    g = dot(a_t, y_ref[...])              # [tE, 32]
    gcol_t = a_t[:, :n_pad]               # lane-aligned slice: scatter rows of this tile

    # NOTE: the scatter contracts axis 0 of both operands (G^T @ msg); Mosaic lowers this as a
    # transposed-LHS MXU contraction (verified working on TPU), no stored Gcol^T copy needed.
    def scatter_add(msg):
        out_ref[...] += lax.dot_general(gcol_t, msg, (((0,), (0,)), ((), ())),
                                        preferred_element_type=f32)

    @pl.when(p == 0)
    def _enc():
        h = _relu(g + b_ref[0])
        h = _relu(dot(h, w_ref[0]) + b_ref[1])
        h = _relu(dot(h, w_ref[1]) + b_ref[2])                   # cols 2:32 exactly 0
        scatter_add(h)

    @pl.when(p == 1)
    def _dec():
        h = _relu(g + b_ref[3])
        h = _relu(dot(h, w_ref[2]) + b_ref[4])
        h = dot(h, w_ref[3]) + b_ref[5]                          # cols 4:32 exactly 0
        scatter_add(h)

    # ---- end of encoder pass: finalize mean aggregation, fold decoder first layer ----
    @pl.when(jnp.logical_and(p == 0, i == nt - 1))
    def _mid():
        x_enc = out_ref[...] * invc_ref[...]                     # [N_pad, 32]; cols 2:32 == 0
        y_ref[pl.ds(0, n_pad), :] = dot(x_enc, w_ref[4])         # dec x_i projection
        y_ref[pl.ds(n_pad, n_pad), :] = dot(x_enc, w_ref[5])     # dec (x_j - x_i) projection
        out_ref[...] = jnp.zeros_like(out_ref)

    # ---- end of decoder pass: finalize mean aggregation (lane-dense output slab) ----
    @pl.when(jnp.logical_and(p == 1, i == nt - 1))
    def _fin():
        out_ref[...] = out_ref[...] * invc_ref[...]


def edgenet_emd_forward(x, edge_index, params, *, tile_e=None):
    """Host wrapper: pads/aligns, builds the [E,2N] gather matrix + degree reciprocals,
    packs weights into slabs and calls the fused two-phase kernel."""
    n, feat = x.shape
    e = edge_index.shape[1]
    row, col = edge_index[0], edge_index[1]     # PyG: row = source (x_j), col = target (x_i)

    n_pad = _round_up(n, 128)                   # lane-align the node axis

    # Per-generation VMEM budget (v7x 64 MiB physical, v5e/v6e 128 MiB), ~25% headroom.
    try:
        info = pltpu.get_tpu_info()
        vmem_cap = int(getattr(info, "vmem_capacity_bytes", 64 * 1024 * 1024))
    except Exception:
        vmem_cap = 64 * 1024 * 1024
    vmem_budget = int(vmem_cap * 3 // 4)

    if tile_e is None:
        # Largest edge tile whose double-buffered bf16 block + one f32 converted copy fits.
        per_row = 2 * n_pad * (2 * 2 + 4)
        tile_e = max(8, min(512, (vmem_budget // 2) // max(per_row, 1)))
        tile_e = max(8, (tile_e // 8) * 8)
    tile_e = min(tile_e, _round_up(e, 8))
    e_pad = _round_up(e, tile_e)

    # ---- dense gather matrix A = [Gcol | Grow - Gcol]   ([E_pad, 2*N_pad], bf16 is exact) ----
    g_col = jax.nn.one_hot(col, n_pad, dtype=jnp.float32)              # [E, N_pad]
    g_row = jax.nn.one_hot(row, n_pad, dtype=jnp.float32)
    a = jnp.concatenate([g_col, g_row - g_col], axis=1)                # [E, 2*N_pad]
    a = jnp.pad(a, ((0, e_pad - e), (0, 0))).astype(jnp.bfloat16)      # padded edges: all-zero

    cnt = jnp.sum(g_col, axis=0)[:, None]                              # in-degree [N_pad, 1]
    inv_cnt = 1.0 / jnp.maximum(cnt, 1.0)                              # padded nodes -> 1.0
    x_p = jnp.pad(x.astype(jnp.float32), ((0, n_pad - n), (0, 0)))

    (gamma, beta, ew1, eb1, ew2, eb2, ew3, eb3,
     dw1, db1, dw2, db2, dw3, db3) = params

    # ---- pack parameters into stacked slabs (static in-kernel slices are free views) ----
    bn_slab = jnp.stack([gamma, beta])[:, None, :]                               # [2, 1, 4]
    w1e_slab = jnp.stack([ew1[:4], ew1[4:8]])                                    # [2, 4, 32]
    w_slab = jnp.stack([
        ew2,                                                                     # [0] enc L2
        jnp.pad(ew3, ((0, 0), (0, 30))),                                         # [1] enc L3 (out pad)
        dw2,                                                                     # [2] dec L2
        jnp.pad(dw3, ((0, 0), (0, 28))),                                         # [3] dec L3 (out pad)
        jnp.pad(dw1[:2], ((0, 30), (0, 0))),                                     # [4] dec L1 x_i (row pad)
        jnp.pad(dw1[2:4], ((0, 30), (0, 0))),                                    # [5] dec L1 diff (row pad)
    ])                                                                           # [6, 32, 32]
    b_slab = jnp.stack([
        eb1, eb2, jnp.pad(eb3, (0, 30)),
        db1, db2, jnp.pad(db3, (0, 28)),
    ])[:, None, :]                                                               # [6, 1, 32]

    grid = (2, e_pad // tile_e)
    out = pl.pallas_call(
        functools.partial(edgenet_emd_kernel, n, n_pad),
        out_shape=jax.ShapeDtypeStruct((n_pad, 32), jnp.float32),
        grid_spec=pltpu.PrefetchScalarGridSpec(
            num_scalar_prefetch=0,
            grid=grid,
            in_specs=[
                pl.BlockSpec((n_pad, feat), lambda p, i: (0, 0)),
                pl.BlockSpec((tile_e, 2 * n_pad), lambda p, i: (i, 0)),
                pl.BlockSpec((n_pad, 1), lambda p, i: (0, 0)),
                pl.BlockSpec((2, 1, feat), lambda p, i: (0, 0, 0)),
                pl.BlockSpec((2, 4, 32), lambda p, i: (0, 0, 0)),
                pl.BlockSpec((6, 32, 32), lambda p, i: (0, 0, 0)),
                pl.BlockSpec((6, 1, 32), lambda p, i: (0, 0, 0)),
            ],
            out_specs=pl.BlockSpec((n_pad, 32), lambda p, i: (0, 0)),
            scratch_shapes=[pltpu.VMEM((2 * n_pad, 32), jnp.float32)],
        ),
        compiler_params=pltpu.CompilerParams(
            dimension_semantics=("arbitrary", "arbitrary"),
            vmem_limit_bytes=vmem_budget,
        ),
    )(x_p, a, inv_cnt, bn_slab, w1e_slab, w_slab, b_slab)

    # Lane-dense kernel output (cols 4:32 are exact zeros); slicing here is free plumbing.
    # TODO(synk): EdgeNetEMD.emd_loss runs a separately-trained, checkpoint-loaded EmdNN model
    # (load_emd_model); its weights are unavailable in-script, so only the reconstruction x is
    # produced.
    return out[:n, :4]


def init_params(key):
    """Deterministic PyTorch-Linear-style init: U(-1/sqrt(fan_in), 1/sqrt(fan_in))."""
    keys = iter(jax.random.split(key, 8))

    def lin(in_dim, out_dim):
        k1, k2 = jax.random.split(next(keys))
        bound = 1.0 / (in_dim ** 0.5)
        w = jax.random.uniform(k1, (in_dim, out_dim), jnp.float32, -bound, bound)
        b = jax.random.uniform(k2, (out_dim,), jnp.float32, -bound, bound)
        return w, b

    gamma = jnp.ones((4,), jnp.float32)          # BatchNorm1d affine (fresh module)
    beta = jnp.zeros((4,), jnp.float32)
    # encoder_nn: Lin(8,32) ReLU Lin(32,32) ReLU Lin(32,2) ReLU
    ew1, eb1 = lin(8, 32)
    ew2, eb2 = lin(32, 32)
    ew3, eb3 = lin(32, 2)
    # decoder_nn: Lin(4,32) ReLU Lin(32,32) ReLU Lin(32,4)
    dw1, db1 = lin(4, 32)
    dw2, db2 = lin(32, 32)
    dw3, db3 = lin(32, 4)
    return (gamma, beta, ew1, eb1, ew2, eb2, ew3, eb3,
            dw1, db1, dw2, db2, dw3, db3)


def reference_forward(x, edge_index, params):
    """Pure-JAX reference replicating BatchNorm1d (batch stats) + PyG EdgeConv(mean) x2."""
    (gamma, beta, ew1, eb1, ew2, eb2, ew3, eb3,
     dw1, db1, dw2, db2, dw3, db3) = params
    row, col = edge_index[0], edge_index[1]
    n = x.shape[0]
    relu = jax.nn.relu

    mean = jnp.mean(x, axis=0, keepdims=True)
    var = jnp.mean((x - mean) ** 2, axis=0, keepdims=True)
    xn = (x - mean) / jnp.sqrt(var + 1e-5) * gamma + beta

    def edge_conv(feat, w1, b1, w2, b2, w3, b3, final_relu):
        x_i, x_j = feat[col], feat[row]                     # target, source
        h = jnp.concatenate([x_i, x_j - x_i], axis=-1)
        h = relu(h @ w1 + b1)
        h = relu(h @ w2 + b2)
        h = h @ w3 + b3
        if final_relu:
            h = relu(h)
        s = jnp.zeros((n, h.shape[1]), jnp.float32).at[col].add(h)
        c = jnp.zeros((n, 1), jnp.float32).at[col].add(1.0)
        return s / jnp.maximum(c, 1.0)

    xe = edge_conv(xn, ew1, eb1, ew2, eb2, ew3, eb3, True)
    return edge_conv(xe, dw1, db1, dw2, db2, dw3, db3, False)


if __name__ == "__main__":
    key = jax.random.PRNGKey(0)
    kx, ke, kp = jax.random.split(key, 3)

    N, E = 8, 16
    x = jax.random.normal(kx, (N, 4), jnp.float32)                        # data.x
    edge_index = jax.random.randint(ke, (2, E), 0, N, dtype=jnp.int32)    # data.edge_index

    params = init_params(kp)

    # tile_e=8 -> two edge tiles per phase, exercising the tiled accumulator + phase hand-off.
    out = edgenet_emd_forward(x, edge_index, params, tile_e=8)
    jax.block_until_ready(out)
    assert out.shape == (N, 4)

    ref = reference_forward(x, edge_index, params)
    np.testing.assert_allclose(np.asarray(out), np.asarray(ref), rtol=1e-4, atol=1e-4)
    print("KERNEL_OK")
</pallas_src>

<mosaic_0001>
module attributes {stable_mosaic.version = 11 : i64} {
  func.func @edgenet_emd_kernel(%arg0: i32, %arg1: i32, %arg2: memref<128x4xf32, #tpu.memory_space<vmem>>, %arg3: memref<8x256xbf16, #tpu.memory_space<vmem>>, %arg4: memref<128x1xf32, #tpu.memory_space<vmem>>, %arg5: memref<2x1x4xf32, #tpu.memory_space<vmem>>, %arg6: memref<2x4x32xf32, #tpu.memory_space<vmem>>, %arg7: memref<6x32x32xf32, #tpu.memory_space<vmem>>, %arg8: memref<6x1x32xf32, #tpu.memory_space<vmem>>, %arg9: memref<128x32xf32, #tpu.memory_space<vmem>>, %arg10: memref<256x32xf32, #tpu.memory_space<vmem>>) attributes {dimension_semantics = [#tpu.dimension_semantics<arbitrary>, #tpu.dimension_semantics<arbitrary>], iteration_bounds = array<i64: 2, 2>, scalar_prefetch = 0 : i64, scratch_operands = 1 : i64, tpu.core_type = #tpu.core_type<tc>, window_params = [{pipeline_mode = #tpu.pipeline_mode<synchronous>, transform_indices = @transform_0, window_bounds = array<i64: 128, 4>}, {transform_indices = @transform_1, window_bounds = array<i64: 8, 256>}, {pipeline_mode = #tpu.pipeline_mode<synchronous>, transform_indices = @transform_2, window_bounds = array<i64: 128, 1>}, {pipeline_mode = #tpu.pipeline_mode<synchronous>, transform_indices = @transform_3, window_bounds = array<i64: 2, 1, 4>}, {pipeline_mode = #tpu.pipeline_mode<synchronous>, transform_indices = @transform_4, window_bounds = array<i64: 2, 4, 32>}, {pipeline_mode = #tpu.pipeline_mode<synchronous>, transform_indices = @transform_5, window_bounds = array<i64: 6, 32, 32>}, {pipeline_mode = #tpu.pipeline_mode<synchronous>, transform_indices = @transform_6, window_bounds = array<i64: 6, 1, 32>}, {pipeline_mode = #tpu.pipeline_mode<synchronous>, transform_indices = @transform_7, window_bounds = array<i64: 128, 32>}]} {
    %c0_i32 = arith.constant 0 : i32
    %0 = arith.cmpi eq, %arg0, %c0_i32 : i32
    %c0_i32_0 = arith.constant 0 : i32
    %1 = arith.cmpi eq, %arg1, %c0_i32_0 : i32
    %2 = arith.andi %0, %1 : i1
    %3 = arith.extui %2 : i1 to i32
    %c0_i32_1 = arith.constant 0 : i32
    %4 = arith.cmpi ne, %3, %c0_i32_1 : i32
    scf.if %4 {
      %c0_14 = arith.constant 0 : index
      %c0_15 = arith.constant 0 : index
      %26 = vector.load %arg2[%c0_14, %c0_15] : memref<128x4xf32, #tpu.memory_space<vmem>>, vector<128x4xf32>
      %cst_16 = arith.constant dense<0.000000e+00> : vector<4xf32>
      %27 = vector.multi_reduction <add>, %26, %cst_16 [0] : vector<128x4xf32> to vector<4xf32>
      %28 = vector.shape_cast %27 : vector<4xf32> to vector<1x4xf32>
      %cst_17 = arith.constant 1.250000e-01 : f32
      %29 = vector.broadcast %cst_17 : f32 to vector<1x4xf32>
      %30 = arith.mulf %28, %29 : vector<1x4xf32>
      %31 = arith.mulf %26, %26 : vector<128x4xf32>
      %cst_18 = arith.constant dense<0.000000e+00> : vector<4xf32>
      %32 = vector.multi_reduction <add>, %31, %cst_18 [0] : vector<128x4xf32> to vector<4xf32>
      %33 = vector.shape_cast %32 : vector<4xf32> to vector<1x4xf32>
      %cst_19 = arith.constant 1.250000e-01 : f32
      %34 = vector.broadcast %cst_19 : f32 to vector<1x4xf32>
      %35 = arith.mulf %33, %34 : vector<1x4xf32>
      %36 = arith.mulf %30, %30 : vector<1x4xf32>
      %37 = arith.subf %35, %36 : vector<1x4xf32>
      %38 = vector.broadcast %30 : vector<1x4xf32> to vector<128x4xf32>
      %39 = arith.subf %26, %38 : vector<128x4xf32>
      %cst_20 = arith.constant 9.99999974E-6 : f32
      %40 = vector.broadcast %cst_20 : f32 to vector<1x4xf32>
      %41 = arith.addf %37, %40 : vector<1x4xf32>
      %42 = math.rsqrt %41 : vector<1x4xf32>
      %43 = vector.broadcast %42 : vector<1x4xf32> to vector<128x4xf32>
      %44 = arith.mulf %39, %43 : vector<128x4xf32>
      %c0_21 = arith.constant 0 : index
      %c0_22 = arith.constant 0 : index
      %c0_23 = arith.constant 0 : index
      %45 = vector.load %arg5[%c0_21, %c0_22, %c0_23] : memref<2x1x4xf32, #tpu.memory_space<vmem>>, vector<1x1x4xf32>
      %46 = vector.shape_cast %45 : vector<1x1x4xf32> to vector<1x4xf32>
      %47 = vector.broadcast %46 : vector<1x4xf32> to vector<128x4xf32>
      %48 = arith.mulf %44, %47 : vector<128x4xf32>
      %c1 = arith.constant 1 : index
      %c0_24 = arith.constant 0 : index
      %c0_25 = arith.constant 0 : index
      %49 = vector.load %arg5[%c1, %c0_24, %c0_25] : memref<2x1x4xf32, #tpu.memory_space<vmem>>, vector<1x1x4xf32>
      %50 = vector.shape_cast %49 : vector<1x1x4xf32> to vector<1x4xf32>
      %51 = vector.broadcast %50 : vector<1x4xf32> to vector<128x4xf32>
      %52 = arith.addf %48, %51 : vector<128x4xf32>
      %c0_26 = arith.constant 0 : index
      %c0_27 = arith.constant 0 : index
      %c0_28 = arith.constant 0 : index
      %53 = vector.load %arg6[%c0_26, %c0_27, %c0_28] : memref<2x4x32xf32, #tpu.memory_space<vmem>>, vector<1x4x32xf32>
      %54 = vector.shape_cast %53 : vector<1x4x32xf32> to vector<4x32xf32>
      %cst_29 = arith.constant dense<0.000000e+00> : vector<128x32xf32>
      %55 = tpu.matmul %52, %54, %cst_29 {dimension_numbers = #tpu.dot_dimension_numbers<[1], [0], [0], [1], [0, 0, 1, 1], [], []>} : vector<128x4xf32>, vector<4x32xf32>, vector<128x32xf32> -> vector<128x32xf32>
      %c0_30 = arith.constant 0 : index
      %c0_31 = arith.constant 0 : index
      %56 = vector.load %arg10[%c0_30, %c0_31] : memref<256x32xf32, #tpu.memory_space<vmem>>, vector<128x32xf32>
      tpu.vector_store %arg10[%c0_30, %c0_31], %55 {strides = array<i32>} : memref<256x32xf32, #tpu.memory_space<vmem>>, vector<128x32xf32>,
      %c1_32 = arith.constant 1 : index
      %c0_33 = arith.constant 0 : index
      %c0_34 = arith.constant 0 : index
      %57 = vector.load %arg6[%c1_32, %c0_33, %c0_34] : memref<2x4x32xf32, #tpu.memory_space<vmem>>, vector<1x4x32xf32>
      %58 = vector.shape_cast %57 : vector<1x4x32xf32> to vector<4x32xf32>
      %cst_35 = arith.constant dense<0.000000e+00> : vector<128x32xf32>
      %59 = tpu.matmul %52, %58, %cst_35 {dimension_numbers = #tpu.dot_dimension_numbers<[1], [0], [0], [1], [0, 0, 1, 1], [], []>} : vector<128x4xf32>, vector<4x32xf32>, vector<128x32xf32> -> vector<128x32xf32>
      %c128 = arith.constant 128 : index
      %c0_36 = arith.constant 0 : index
      %60 = vector.load %arg10[%c128, %c0_36] : memref<256x32xf32, #tpu.memory_space<vmem>>, vector<128x32xf32>
      tpu.vector_store %arg10[%c128, %c0_36], %59 {strides = array<i32>} : memref<256x32xf32, #tpu.memory_space<vmem>>, vector<128x32xf32>,
      %cst_37 = arith.constant 0.000000e+00 : f32
      %61 = vector.broadcast %cst_37 : f32 to vector<128x32xf32>
      %c0_38 = arith.constant 0 : index
      %c0_39 = arith.constant 0 : index
      %62 = vector.load %arg9[%c0_38, %c0_39] : memref<128x32xf32, #tpu.memory_space<vmem>>, vector<128x32xf32>
      tpu.vector_store %arg9[%c0_38, %c0_39], %61 {strides = array<i32>} : memref<128x32xf32, #tpu.memory_space<vmem>>, vector<128x32xf32>,
    } else {
    }
    %c0 = arith.constant 0 : index
    %c0_2 = arith.constant 0 : index
    %5 = vector.load %arg3[%c0, %c0_2] : memref<8x256xbf16, #tpu.memory_space<vmem>>, vector<8x256xbf16>
    %6 = arith.extf %5 : vector<8x256xbf16> to vector<8x256xf32>
    %c0_3 = arith.constant 0 : index
    %c0_4 = arith.constant 0 : index
    %7 = vector.load %arg10[%c0_3, %c0_4] : memref<256x32xf32, #tpu.memory_space<vmem>>, vector<256x32xf32>
    %cst = arith.constant dense<0.000000e+00> : vector<8x32xf32>
    %8 = tpu.matmul %6, %7, %cst {dimension_numbers = #tpu.dot_dimension_numbers<[1], [0], [0], [1], [0, 0, 1, 1], [], []>} : vector<8x256xf32>, vector<256x32xf32>, vector<8x32xf32> -> vector<8x32xf32>
    %9 = vector.extract_strided_slice %6 {offsets = [0, 0], sizes = [8, 128], strides = [1, 1]} : vector<8x256xf32> to vector<8x128xf32>
    %c0_i32_5 = arith.constant 0 : i32
    %10 = arith.cmpi eq, %arg0, %c0_i32_5 : i32
    %11 = arith.extui %10 : i1 to i32
    %c0_i32_6 = arith.constant 0 : i32
    %12 = arith.cmpi ne, %11, %c0_i32_6 : i32
    scf.if %12 {
      %c0_14 = arith.constant 0 : index
      %c0_15 = arith.constant 0 : index
      %c0_16 = arith.constant 0 : index
      %26 = vector.load %arg8[%c0_14, %c0_15, %c0_16] : memref<6x1x32xf32, #tpu.memory_space<vmem>>, vector<1x1x32xf32>
      %27 = vector.shape_cast %26 : vector<1x1x32xf32> to vector<1x32xf32>
      %28 = vector.broadcast %27 : vector<1x32xf32> to vector<8x32xf32>
      %29 = arith.addf %8, %28 : vector<8x32xf32>
      %cst_17 = arith.constant 0.000000e+00 : f32
      %30 = vector.broadcast %cst_17 : f32 to vector<8x32xf32>
      %31 = arith.maximumf %29, %30 : vector<8x32xf32>
      %c0_18 = arith.constant 0 : index
      %c0_19 = arith.constant 0 : index
      %c0_20 = arith.constant 0 : index
      %32 = vector.load %arg7[%c0_18, %c0_19, %c0_20] : memref<6x32x32xf32, #tpu.memory_space<vmem>>, vector<1x32x32xf32>
      %33 = vector.shape_cast %32 : vector<1x32x32xf32> to vector<32x32xf32>
      %cst_21 = arith.constant dense<0.000000e+00> : vector<8x32xf32>
      %34 = tpu.matmul %31, %33, %cst_21 {dimension_numbers = #tpu.dot_dimension_numbers<[1], [0], [0], [1], [0, 0, 1, 1], [], []>} : vector<8x32xf32>, vector<32x32xf32>, vector<8x32xf32> -> vector<8x32xf32>
      %c1 = arith.constant 1 : index
      %c0_22 = arith.constant 0 : index
      %c0_23 = arith.constant 0 : index
      %35 = vector.load %arg8[%c1, %c0_22, %c0_23] : memref<6x1x32xf32, #tpu.memory_space<vmem>>, vector<1x1x32xf32>
      %36 = vector.shape_cast %35 : vector<1x1x32xf32> to vector<1x32xf32>
      %37 = vector.broadcast %36 : vector<1x32xf32> to vector<8x32xf32>
      %38 = arith.addf %34, %37 : vector<8x32xf32>
      %cst_24 = arith.constant 0.000000e+00 : f32
      %39 = vector.broadcast %cst_24 : f32 to vector<8x32xf32>
      %40 = arith.maximumf %38, %39 : vector<8x32xf32>
      %c1_25 = arith.constant 1 : index
      %c0_26 = arith.constant 0 : index
      %c0_27 = arith.constant 0 : index
      %41 = vector.load %arg7[%c1_25, %c0_26, %c0_27] : memref<6x32x32xf32, #tpu.memory_space<vmem>>, vector<1x32x32xf32>
      %42 = vector.shape_cast %41 : vector<1x32x32xf32> to vector<32x32xf32>
      %cst_28 = arith.constant dense<0.000000e+00> : vector<8x32xf32>
      %43 = tpu.matmul %40, %42, %cst_28 {dimension_numbers = #tpu.dot_dimension_numbers<[1], [0], [0], [1], [0, 0, 1, 1], [], []>} : vector<8x32xf32>, vector<32x32xf32>, vector<8x32xf32> -> vector<8x32xf32>
      %c2 = arith.constant 2 : index
      %c0_29 = arith.constant 0 : index
      %c0_30 = arith.constant 0 : index
      %44 = vector.load %arg8[%c2, %c0_29, %c0_30] : memref<6x1x32xf32, #tpu.memory_space<vmem>>, vector<1x1x32xf32>
      %45 = vector.shape_cast %44 : vector<1x1x32xf32> to vector<1x32xf32>
      %46 = vector.broadcast %45 : vector<1x32xf32> to vector<8x32xf32>
      %47 = arith.addf %43, %46 : vector<8x32xf32>
      %cst_31 = arith.constant 0.000000e+00 : f32
      %48 = vector.broadcast %cst_31 : f32 to vector<8x32xf32>
      %49 = arith.maximumf %47, %48 : vector<8x32xf32>
      %c0_32 = arith.constant 0 : index
      %c0_33 = arith.constant 0 : index
      %50 = vector.load %arg9[%c0_32, %c0_33] : memref<128x32xf32, #tpu.memory_space<vmem>>, vector<128x32xf32>
      %cst_34 = arith.constant dense<0.000000e+00> : vector<128x32xf32>
      %51 = tpu.matmul %9, %49, %cst_34 {dimension_numbers = #tpu.dot_dimension_numbers<[0], [0], [1], [1], [0, 1, 1, 1], [], []>} : vector<8x128xf32>, vector<8x32xf32>, vector<128x32xf32> -> vector<128x32xf32>
      %52 = arith.addf %50, %51 : vector<128x32xf32>
      %c0_35 = arith.constant 0 : index
      %c0_36 = arith.constant 0 : index
      %53 = vector.load %arg9[%c0_35, %c0_36] : memref<128x32xf32, #tpu.memory_space<vmem>>, vector<128x32xf32>
      tpu.vector_store %arg9[%c0_35, %c0_36], %52 {strides = array<i32>} : memref<128x32xf32, #tpu.memory_space<vmem>>, vector<128x32xf32>,
    } else {
    }
    %c1_i32 = arith.constant 1 : i32
    %13 = arith.cmpi eq, %arg0, %c1_i32 : i32
    %14 = arith.extui %13 : i1 to i32
    %c0_i32_7 = arith.constant 0 : i32
    %15 = arith.cmpi ne, %14, %c0_i32_7 : i32
    scf.if %15 {
      %c3 = arith.constant 3 : index
      %c0_14 = arith.constant 0 : index
      %c0_15 = arith.constant 0 : index
      %26 = vector.load %arg8[%c3, %c0_14, %c0_15] : memref<6x1x32xf32, #tpu.memory_space<vmem>>, vector<1x1x32xf32>
      %27 = vector.shape_cast %26 : vector<1x1x32xf32> to vector<1x32xf32>
      %28 = vector.broadcast %27 : vector<1x32xf32> to vector<8x32xf32>
      %29 = arith.addf %8, %28 : vector<8x32xf32>
      %cst_16 = arith.constant 0.000000e+00 : f32
      %30 = vector.broadcast %cst_16 : f32 to vector<8x32xf32>
      %31 = arith.maximumf %29, %30 : vector<8x32xf32>
      %c2 = arith.constant 2 : index
      %c0_17 = arith.constant 0 : index
      %c0_18 = arith.constant 0 : index
      %32 = vector.load %arg7[%c2, %c0_17, %c0_18] : memref<6x32x32xf32, #tpu.memory_space<vmem>>, vector<1x32x32xf32>
      %33 = vector.shape_cast %32 : vector<1x32x32xf32> to vector<32x32xf32>
      %cst_19 = arith.constant dense<0.000000e+00> : vector<8x32xf32>
      %34 = tpu.matmul %31, %33, %cst_19 {dimension_numbers = #tpu.dot_dimension_numbers<[1], [0], [0], [1], [0, 0, 1, 1], [], []>} : vector<8x32xf32>, vector<32x32xf32>, vector<8x32xf32> -> vector<8x32xf32>
      %c4 = arith.constant 4 : index
      %c0_20 = arith.constant 0 : index
      %c0_21 = arith.constant 0 : index
      %35 = vector.load %arg8[%c4, %c0_20, %c0_21] : memref<6x1x32xf32, #tpu.memory_space<vmem>>, vector<1x1x32xf32>
      %36 = vector.shape_cast %35 : vector<1x1x32xf32> to vector<1x32xf32>
      %37 = vector.broadcast %36 : vector<1x32xf32> to vector<8x32xf32>
      %38 = arith.addf %34, %37 : vector<8x32xf32>
      %cst_22 = arith.constant 0.000000e+00 : f32
      %39 = vector.broadcast %cst_22 : f32 to vector<8x32xf32>
      %40 = arith.maximumf %38, %39 : vector<8x32xf32>
      %c3_23 = arith.constant 3 : index
      %c0_24 = arith.constant 0 : index
      %c0_25 = arith.constant 0 : index
      %41 = vector.load %arg7[%c3_23, %c0_24, %c0_25] : memref<6x32x32xf32, #tpu.memory_space<vmem>>, vector<1x32x32xf32>
      %42 = vector.shape_cast %41 : vector<1x32x32xf32> to vector<32x32xf32>
      %cst_26 = arith.constant dense<0.000000e+00> : vector<8x32xf32>
      %43 = tpu.matmul %40, %42, %cst_26 {dimension_numbers = #tpu.dot_dimension_numbers<[1], [0], [0], [1], [0, 0, 1, 1], [], []>} : vector<8x32xf32>, vector<32x32xf32>, vector<8x32xf32> -> vector<8x32xf32>
      %c5 = arith.constant 5 : index
      %c0_27 = arith.constant 0 : index
      %c0_28 = arith.constant 0 : index
      %44 = vector.load %arg8[%c5, %c0_27, %c0_28] : memref<6x1x32xf32, #tpu.memory_space<vmem>>, vector<1x1x32xf32>
      %45 = vector.shape_cast %44 : vector<1x1x32xf32> to vector<1x32xf32>
      %46 = vector.broadcast %45 : vector<1x32xf32> to vector<8x32xf32>
      %47 = arith.addf %43, %46 : vector<8x32xf32>
      %c0_29 = arith.constant 0 : index
      %c0_30 = arith.constant 0 : index
      %48 = vector.load %arg9[%c0_29, %c0_30] : memref<128x32xf32, #tpu.memory_space<vmem>>, vector<128x32xf32>
      %cst_31 = arith.constant dense<0.000000e+00> : vector<128x32xf32>
      %49 = tpu.matmul %9, %47, %cst_31 {dimension_numbers = #tpu.dot_dimension_numbers<[0], [0], [1], [1], [0, 1, 1, 1], [], []>} : vector<8x128xf32>, vector<8x32xf32>, vector<128x32xf32> -> vector<128x32xf32>
      %50 = arith.addf %48, %49 : vector<128x32xf32>
      %c0_32 = arith.constant 0 : index
      %c0_33 = arith.constant 0 : index
      %51 = vector.load %arg9[%c0_32, %c0_33] : memref<128x32xf32, #tpu.memory_space<vmem>>, vector<128x32xf32>
      tpu.vector_store %arg9[%c0_32, %c0_33], %50 {strides = array<i32>} : memref<128x32xf32, #tpu.memory_space<vmem>>, vector<128x32xf32>,
    } else {
    }
    %c0_i32_8 = arith.constant 0 : i32
    %16 = arith.cmpi eq, %arg0, %c0_i32_8 : i32
    %c1_i32_9 = arith.constant 1 : i32
    %17 = arith.cmpi eq, %arg1, %c1_i32_9 : i32
    %18 = arith.andi %16, %17 : i1
    %19 = arith.extui %18 : i1 to i32
    %c0_i32_10 = arith.constant 0 : i32
    %20 = arith.cmpi ne, %19, %c0_i32_10 : i32
    scf.if %20 {
      %c0_14 = arith.constant 0 : index
      %c0_15 = arith.constant 0 : index
      %26 = vector.load %arg9[%c0_14, %c0_15] : memref<128x32xf32, #tpu.memory_space<vmem>>, vector<128x32xf32>
      %c0_16 = arith.constant 0 : index
      %c0_17 = arith.constant 0 : index
      %27 = vector.load %arg4[%c0_16, %c0_17] : memref<128x1xf32, #tpu.memory_space<vmem>>, vector<128x1xf32>
      %28 = vector.broadcast %27 : vector<128x1xf32> to vector<128x32xf32>
      %29 = arith.mulf %26, %28 : vector<128x32xf32>
      %c4 = arith.constant 4 : index
      %c0_18 = arith.constant 0 : index
      %c0_19 = arith.constant 0 : index
      %30 = vector.load %arg7[%c4, %c0_18, %c0_19] : memref<6x32x32xf32, #tpu.memory_space<vmem>>, vector<1x32x32xf32>
      %31 = vector.shape_cast %30 : vector<1x32x32xf32> to vector<32x32xf32>
      %cst_20 = arith.constant dense<0.000000e+00> : vector<128x32xf32>
      %32 = tpu.matmul %29, %31, %cst_20 {dimension_numbers = #tpu.dot_dimension_numbers<[1], [0], [0], [1], [0, 0, 1, 1], [], []>} : vector<128x32xf32>, vector<32x32xf32>, vector<128x32xf32> -> vector<128x32xf32>
      %c0_21 = arith.constant 0 : index
      %c0_22 = arith.constant 0 : index
      %33 = vector.load %arg10[%c0_21, %c0_22] : memref<256x32xf32, #tpu.memory_space<vmem>>, vector<128x32xf32>
      tpu.vector_store %arg10[%c0_21, %c0_22], %32 {strides = array<i32>} : memref<256x32xf32, #tpu.memory_space<vmem>>, vector<128x32xf32>,
      %c5 = arith.constant 5 : index
      %c0_23 = arith.constant 0 : index
      %c0_24 = arith.constant 0 : index
      %34 = vector.load %arg7[%c5, %c0_23, %c0_24] : memref<6x32x32xf32, #tpu.memory_space<vmem>>, vector<1x32x32xf32>
      %35 = vector.shape_cast %34 : vector<1x32x32xf32> to vector<32x32xf32>
      %cst_25 = arith.constant dense<0.000000e+00> : vector<128x32xf32>
      %36 = tpu.matmul %29, %35, %cst_25 {dimension_numbers = #tpu.dot_dimension_numbers<[1], [0], [0], [1], [0, 0, 1, 1], [], []>} : vector<128x32xf32>, vector<32x32xf32>, vector<128x32xf32> -> vector<128x32xf32>
      %c128 = arith.constant 128 : index
      %c0_26 = arith.constant 0 : index
      %37 = vector.load %arg10[%c128, %c0_26] : memref<256x32xf32, #tpu.memory_space<vmem>>, vector<128x32xf32>
      tpu.vector_store %arg10[%c128, %c0_26], %36 {strides = array<i32>} : memref<256x32xf32, #tpu.memory_space<vmem>>, vector<128x32xf32>,
      %cst_27 = arith.constant 0.000000e+00 : f32
      %38 = vector.broadcast %cst_27 : f32 to vector<128x32xf32>
      %c0_28 = arith.constant 0 : index
      %c0_29 = arith.constant 0 : index
      %39 = vector.load %arg9[%c0_28, %c0_29] : memref<128x32xf32, #tpu.memory_space<vmem>>, vector<128x32xf32>
      tpu.vector_store %arg9[%c0_28, %c0_29], %38 {strides = array<i32>} : memref<128x32xf32, #tpu.memory_space<vmem>>, vector<128x32xf32>,
    } else {
    }
    %c1_i32_11 = arith.constant 1 : i32
    %21 = arith.cmpi eq, %arg0, %c1_i32_11 : i32
    %c1_i32_12 = arith.constant 1 : i32
    %22 = arith.cmpi eq, %arg1, %c1_i32_12 : i32
    %23 = arith.andi %21, %22 : i1
    %24 = arith.extui %23 : i1 to i32
    %c0_i32_13 = arith.constant 0 : i32
    %25 = arith.cmpi ne, %24, %c0_i32_13 : i32
    scf.if %25 {
      %c0_14 = arith.constant 0 : index
      %c0_15 = arith.constant 0 : index
      %26 = vector.load %arg9[%c0_14, %c0_15] : memref<128x32xf32, #tpu.memory_space<vmem>>, vector<128x32xf32>
      %c0_16 = arith.constant 0 : index
      %c0_17 = arith.constant 0 : index
      %27 = vector.load %arg4[%c0_16, %c0_17] : memref<128x1xf32, #tpu.memory_space<vmem>>, vector<128x1xf32>
      %28 = vector.broadcast %27 : vector<128x1xf32> to vector<128x32xf32>
      %29 = arith.mulf %26, %28 : vector<128x32xf32>
      %c0_18 = arith.constant 0 : index
      %c0_19 = arith.constant 0 : index
      %30 = vector.load %arg9[%c0_18, %c0_19] : memref<128x32xf32, #tpu.memory_space<vmem>>, vector<128x32xf32>
      tpu.vector_store %arg9[%c0_18, %c0_19], %29 {strides = array<i32>} : memref<128x32xf32, #tpu.memory_space<vmem>>, vector<128x32xf32>,
    } else {
    }
    return
  }
  func.func @transform_0(%arg0: i32, %arg1: i32) -> (i32, i32) {
    %c0_i32 = arith.constant 0 : i32
    %c0_i32_0 = arith.constant 0 : i32
    %c0_i32_1 = arith.constant 0 : i32
    return %c0_i32, %c0_i32_0 : i32, i32
  }
  func.func @transform_1(%arg0: i32, %arg1: i32) -> (i32, i32) {
    %c0_i32 = arith.constant 0 : i32
    %c0_i32_0 = arith.constant 0 : i32
    return %arg1, %c0_i32 : i32, i32
  }
  func.func @transform_2(%arg0: i32, %arg1: i32) -> (i32, i32) {
    %c0_i32 = arith.constant 0 : i32
    %c0_i32_0 = arith.constant 0 : i32
    %c0_i32_1 = arith.constant 0 : i32
    return %c0_i32, %c0_i32_0 : i32, i32
  }
  func.func @transform_3(%arg0: i32, %arg1: i32) -> (i32, i32, i32) {
    %c0_i32 = arith.constant 0 : i32
    %c0_i32_0 = arith.constant 0 : i32
    %c0_i32_1 = arith.constant 0 : i32
    %c0_i32_2 = arith.constant 0 : i32
    return %c0_i32, %c0_i32_0, %c0_i32_1 : i32, i32, i32
  }
  func.func @transform_4(%arg0: i32, %arg1: i32) -> (i32, i32, i32) {
    %c0_i32 = arith.constant 0 : i32
    %c0_i32_0 = arith.constant 0 : i32
    %c0_i32_1 = arith.constant 0 : i32
    %c0_i32_2 = arith.constant 0 : i32
    return %c0_i32, %c0_i32_0, %c0_i32_1 : i32, i32, i32
  }
  func.func @transform_5(%arg0: i32, %arg1: i32) -> (i32, i32, i32) {
    %c0_i32 = arith.constant 0 : i32
    %c0_i32_0 = arith.constant 0 : i32
    %c0_i32_1 = arith.constant 0 : i32
    %c0_i32_2 = arith.constant 0 : i32
    return %c0_i32, %c0_i32_0, %c0_i32_1 : i32, i32, i32
  }
  func.func @transform_6(%arg0: i32, %arg1: i32) -> (i32, i32, i32) {
    %c0_i32 = arith.constant 0 : i32
    %c0_i32_0 = arith.constant 0 : i32
    %c0_i32_1 = arith.constant 0 : i32
    %c0_i32_2 = arith.constant 0 : i32
    return %c0_i32, %c0_i32_0, %c0_i32_1 : i32, i32, i32
  }
  func.func @transform_7(%arg0: i32, %arg1: i32) -> (i32, i32) {
    %c0_i32 = arith.constant 0 : i32
    %c0_i32_0 = arith.constant 0 : i32
    %c0_i32_1 = arith.constant 0 : i32
    return %c0_i32, %c0_i32_0 : i32, i32
  }
}

</mosaic_0001>

<bundles_post_ra>
// kernel: tpu_custom_call.1
= control target key start
LH: loop header
LB: loop body
LE: loop exit
PB: predicated region body
PF: predicated region fallthrough
CT: control target
= control target key end

     0   :  { %s3361_s24 = smov 0   ;;  %s3363_s25 = smov 0   ;;  %s4613_s0 = inlined_call_operand.vmem [shape: f32[128,4], index: 0, kind: input, shape index: {}]   ;;  %s4614_s1 = inlined_call_operand.vmem [shape: bf16[16,256], index: 1, kind: input, shape index: {}]   ;;  %s4615_s2 = inlined_call_operand.vmem [shape: f32[128,1], index: 2, kind: input, shape index: {}]   ;;  %s4616_s3 = inlined_call_operand.vmem [shape: f32[2,1,4], index: 3, kind: input, shape index: {}]   ;;  %s4617_s4 = inlined_call_operand.vmem [shape: f32[2,4,32], index: 4, kind: input, shape index: {}]   ;;  %s4618_s5 = inlined_call_operand.vmem [shape: f32[6,32,32], index: 5, kind: input, shape index: {}]   ;;  %s4619_s6 = inlined_call_operand.vmem [shape: f32[6,1,32], index: 6, kind: input, shape index: {}]   ;;  %s4620_s7 = inlined_call_operand.vmem [shape: f32[128,32], index: 7, kind: output, shape index: {}]  }
   0x1   :  { %s3365_s26 = smov 0   ;;  %s3367_s27 = smov 0  }
   0x2   :  { %s3369_s28 = smov 0  }
   0x3 LB: > { %s26_s29 = sadd.s32 1, %s3301_s26  ;;  %s29_s30 = sadd.s32 1, %s3305_s27  ;;  %s3309_s28 = sphi %s3369_s28, %s17_s28   ;;  %s3305_s27 = sphi %s3367_s27, %s4624_s27   ;;  %s3301_s26 = sphi %s3365_s26, %s4623_s26   ;;  %s3297_s25 = sphi %s3363_s25, %s4622_s25   ;;  %s3293_s24 = sphi %s3361_s24, %s4621_s24  }
   0x4   : > { %p27_p0 = scmp.ge.s32.totalorder %s26_s29, 2  ;;  %p2619_p1 = scmp.ge.s32.totalorder %s3309_s28, 1 }
   0x5   : > { %p244_p2 = scmp.lt.s32.totalorder %s3309_s28, 5 }
   0x6   : > { %s4626_s29 = smov (%p27_p0, %s26_s29), 0  ;;  %s4628_s30 = smov (!%p27_p0, %s29_s30), %s3305_s27 }
   0x7   : > { %p245_p3 = pnand %p2619_p1, %p244_p2  ;;  %p31_p4 = scmp.ge.s32.totalorder %s4628_s30, 2 }
   0x8   : > { %p271_p5 = scmp.lt.s32.totalorder (!%p245_p3), %s3293_s24, 1  ;;  %p276_p6 = scmp.eq.s32.totalorder (!%p245_p3), %s3297_s25, 0 }
   0x9   : > { %s4630_s30 = smov (%p31_p4, %s4628_s30), 0  ;;  %248 = sbr.rel (%p245_p3) target bundleno = 2461 (0x99d), region = 48 }
   0xa   : > { %p277_p7 = scmp.eq.s32.totalorder (!%p245_p3), %s3293_s24, 0 }
   0xc   : > { %p278_p8 = pnand (!%p245_p3), %p277_p7, %p276_p6 }
  0x10   : > { %s272_s8 = scalar_select %p271_p5, %s3293_s24, 1 }
  0x11   : > { %281 = sbr.rel (%p278_p8) target bundleno = 331 (0x14b), region = 52  ;;  %v474_v0 = vld [vmem:[%s4617_s4] sm:$0xf] (!%p278_p8)  ;;  %vm523_vm0 = vcmask (!%p278_p8), 1043456   ;;  %v2642_v1 = vld [vmem:[%s4617_s4 + $0x4] sm:$0xf] (!%p278_p8) }
  0x12   : > { %s2763_s9 = sshll.u32 %s272_s8, 3  ;;  %v3415_v2 = vld [vmem:[%s4613_s0] sm:$0xff] (!%p278_p8)  ;;  %2927 = vmatprep.subr.msk.mxu0 (!%p278_p8), %vm523_vm0, %v474_v0  ;;  %2953 = vmatprep.subr.msk.mxu1 (!%p278_p8), %vm523_vm0, %v2642_v1  ;;  %v3420_v3 = vld [vmem:[%s4613_s0 + $0x8] sm:$0xff] (!%p278_p8)  ;;  %v3425_v4 = vld [vmem:[%s4613_s0 + $0x10] sm:$0xff] (!%p278_p8)  ;;  %vm298_vm1 = vcmask (!%p278_p8), 31744   ;;  %vm672_vm2 = vcmask (!%p278_p8), 261120  }
  0x13   : > { %s3404_s12 = scalar_lea.vmem %s4614_s1, %s2763_s9  ;;  %v3430_v5 = vld [vmem:[%s4613_s0 + $0x18] sm:$0xff] (!%p278_p8)  ;;  %2928 = vmatpush3.msk.msra.mxu0 (!%p278_p8), %vm523_vm0, %v474_v0  ;;  %v299_v6 = vsel (!%p278_p8), %vm298_vm1, %v3415_v2, 0.0  ;;  %v300_v7 = vsel (!%p278_p8), %vm298_vm1, %v3420_v3, 0.0  ;;  %v302_v8 = vsel (!%p278_p8), %vm298_vm1, %v3425_v4, 0.0  ;;  %2954 = vmatpush3.msk.msra.mxu1 (!%p278_p8), %vm523_vm0, %v2642_v1  ;;  %v3441_v9 = vld [vmem:[%s4613_s0 + $0x20] sm:$0xff] (!%p278_p8)  ;;  %v3448_v12 = vld [vmem:[%s4613_s0 + $0x28] sm:$0xff] (!%p278_p8)  ;;  %v337_v15 = vmul.f32 (!%p278_p8), %v3415_v2, %v3415_v2 }
  0x14   : > { %v301_v10 = vadd.f32 (!%p278_p8), %v300_v7, %v299_v6  ;;  %v304_v11 = vsel (!%p278_p8), %vm298_vm1, %v3430_v5, 0.0  ;;  %v306_v14 = vsel (!%p278_p8), %vm298_vm1, %v3441_v9, 0.0  ;;  %v3457_v16 = vld [vmem:[%s4613_s0 + $0x30] sm:$0xff] (!%p278_p8)  ;;  %v338_v18 = vmul.f32 (!%p278_p8), %v3420_v3, %v3420_v3  ;;  %v3468_v21 = vld [vmem:[%s4613_s0 + $0x38] sm:$0xff] (!%p278_p8)  ;;  %v3478_v26 = vld [vmem:[%s4613_s0 + $0x40] sm:$0xff] (!%p278_p8) }
  0x15   : > { %v339_v19 = vmul.f32 (!%p278_p8), %v3425_v4, %v3425_v4  ;;  %v308_v20 = vsel (!%p278_p8), %vm298_vm1, %v3448_v12, 0.0  ;;  %v340_v23 = vmul.f32 (!%p278_p8), %v3430_v5, %v3430_v5  ;;  %v310_v24 = vsel (!%p278_p8), %vm298_vm1, %v3457_v16, 0.0  ;;  %v3489_v33 = vld [vmem:[%s4613_s0 + $0x48] sm:$0xff] (!%p278_p8)  ;;  %v3499_v39 = vld [vmem:[%s4613_s0 + $0x50] sm:$0xff] (!%p278_p8)  ;;  %v3509_v45 = vld [vmem:[%s4613_s0 + $0x58] sm:$0xff] (!%p278_p8) }
  0x16   : > { %v303_v13 = vadd.f32 (!%p278_p8), %v302_v8, %v301_v10  ;;  %v353_v25 = vsel (!%p278_p8), %vm298_vm1, %v337_v15, 0.0  ;;  %v341_v28 = vmul.f32 (!%p278_p8), %v3441_v9, %v3441_v9  ;;  %v354_v29 = vsel (!%p278_p8), %vm298_vm1, %v338_v18, 0.0  ;;  %v3519_v51 = vld [vmem:[%s4613_s0 + $0x60] sm:$0xff] (!%p278_p8)  ;;  %v3529_v57 = vld [vmem:[%s4613_s0 + $0x68] sm:$0xff] (!%p278_p8)  ;;  %v3539_v63 = vld [vmem:[%s4613_s0 + $0x70] sm:$0xff] (!%p278_p8) }
  0x17   : > { %v356_v30 = vsel (!%p278_p8), %vm298_vm1, %v339_v19, 0.0  ;;  %v312_v31 = vsel (!%p278_p8), %vm298_vm1, %v3468_v21, 0.0  ;;  %v355_v32 = vadd.f32 (!%p278_p8), %v354_v29, %v353_v25  ;;  %v342_v35 = vmul.f32 (!%p278_p8), %v3448_v12, %v3448_v12  ;;  %v3549_v10 = vld [vmem:[%s4613_s0 + $0x78] sm:$0xff] (!%p278_p8) }
  0x18   : > { %v305_v17 = vadd.f32 %v304_v11, %v303_v13  ;;  %v358_v36 = vsel %vm298_vm1, %v340_v23, 0.0  ;;  %v314_v37 = vsel %vm298_vm1, %v3478_v26, 0.0  ;;  %v343_v41 = vmul.f32 %v3457_v16, %v3457_v16 }
  0x19   : > { %v357_v38 = vadd.f32 %v356_v30, %v355_v32  ;;  %v360_v42 = vsel %vm298_vm1, %v341_v28, 0.0  ;;  %v316_v43 = vsel %vm298_vm1, %v3489_v33, 0.0  ;;  %v344_v47 = vmul.f32 %v3468_v21, %v3468_v21 }
  0x1a   : > { %v307_v22 = vadd.f32 %v306_v14, %v305_v17  ;;  %v362_v48 = vsel %vm298_vm1, %v342_v35, 0.0  ;;  %v318_v49 = vsel %vm298_vm1, %v3499_v39, 0.0  ;;  %v345_v53 = vmul.f32 %v3478_v26, %v3478_v26 }
  0x1b   : > { %v359_v44 = vadd.f32 %v358_v36, %v357_v38  ;;  %v364_v54 = vsel %vm298_vm1, %v343_v41, 0.0  ;;  %v320_v55 = vsel %vm298_vm1, %v3509_v45, 0.0  ;;  %v346_v59 = vmul.f32 %v3489_v33, %v3489_v33 }
  0x1c   : > { %v309_v27 = vadd.f32 %v308_v20, %v307_v22  ;;  %v366_v60 = vsel %vm298_vm1, %v344_v47, 0.0  ;;  %v322_v61 = vsel %vm298_vm1, %v3519_v51, 0.0  ;;  %v347_v1 = vmul.f32 %v3499_v39, %v3499_v39 }
  0x1d   : > { %v361_v50 = vadd.f32 %v360_v42, %v359_v44  ;;  %v368_v6 = vsel %vm298_vm1, %v345_v53, 0.0  ;;  %v324_v7 = vsel %vm298_vm1, %v3529_v57, 0.0  ;;  %v348_v13 = vmul.f32 %v3509_v45, %v3509_v45 }
  0x1e   : > { %v311_v34 = vadd.f32 %v310_v24, %v309_v27  ;;  %v370_v14 = vsel %vm298_vm1, %v346_v59, 0.0  ;;  %v326_v15 = vsel %vm298_vm1, %v3539_v63, 0.0  ;;  %v349_v19 = vmul.f32 %v3519_v51, %v3519_v51 }
  0x1f   : > { %v363_v56 = vadd.f32 %v362_v48, %v361_v50  ;;  %v372_v20 = vsel %vm298_vm1, %v347_v1, 0.0  ;;  %v328_v22 = vsel %vm298_vm1, %v3549_v10, 0.0  ;;  %v350_v25 = vmul.f32 %v3529_v57, %v3529_v57 }
  0x20   : > { %v313_v40 = vadd.f32 %v312_v31, %v311_v34  ;;  %v374_v27 = vsel %vm298_vm1, %v348_v13, 0.0  ;;  %v351_v30 = vmul.f32 %v3539_v63, %v3539_v63  ;;  %v376_v31 = vsel %vm298_vm1, %v349_v19, 0.0  ;;  %v3591_v13 = vld [vmem:[%s4616_s3] ss:$0 sm:$0xff] }
  0x21   : > { %v365_v62 = vadd.f32 %v364_v54, %v363_v56  ;;  %v352_v35 = vmul.f32 %v3549_v10, %v3549_v10  ;;  %v378_v36 = vsel %vm298_vm1, %v350_v25, 0.0 }
  0x22   : > { %v315_v46 = vadd.f32 %v314_v37, %v313_v40  ;;  %v380_v40 = vsel %vm298_vm1, %v351_v30, 0.0 }
  0x23   : > { %v367_v8 = vadd.f32 %v366_v60, %v365_v62 }
  0x24   : > { %v317_v52 = vadd.f32 %v316_v43, %v315_v46  ;;  %v382_v43 = vsel %vm298_vm1, %v352_v35, 0.0 }
  0x25   : > { %v369_v17 = vadd.f32 %v368_v6, %v367_v8 }
  0x26   : > { %v319_v58 = vadd.f32 %v318_v49, %v317_v52 }
  0x27   : > { %v371_v23 = vadd.f32 %v370_v14, %v369_v17 }
  0x28   : > { %v321_v0 = vadd.f32 %v320_v55, %v319_v58 }
  0x29   : > { %v373_v28 = vadd.f32 %v372_v20, %v371_v23 }
  0x2a   : > { %v323_v11 = vadd.f32 %v322_v61, %v321_v0 }
  0x2b   : > { %v375_v32 = vadd.f32 %v374_v27, %v373_v28 }
  0x2c   : > { %v325_v18 = vadd.f32 %v324_v7, %v323_v11 }
  0x2d   : > { %v377_v37 = vadd.f32 %v376_v31, %v375_v32 }
  0x2e   : > { %v327_v24 = vadd.f32 %v326_v15, %v325_v18  ;;  %v3604_v15 = vld [vmem:[%s4616_s3 + $0x1] ss:$0 sm:$0xff] }
  0x2f   : > { %v379_v41 = vadd.f32 %v378_v36, %v377_v37 }
  0x30   : > { %v329_v29 = vadd.f32 %v328_v22, %v327_v24 }
  0x31   : > { %v381_v44 = vadd.f32 %v380_v40, %v379_v41 }
  0x32   : > { %v330_v34 = vrot.slane %v329_v29, 4 }
  0x33   : > { %v383_v47 = vadd.f32 %v382_v43, %v381_v44 }
  0x34   : > { %v331_v38 = vadd.f32 %v330_v34, %v329_v29 }
  0x35   : > { %v384_v49 = vrot.slane %v383_v47, 4 }
  0x36   : > { %v332_v42 = vrot.slane %v331_v38, 2 }
  0x37   : > { %v385_v52 = vadd.f32 %v384_v49, %v383_v47 }
  0x38   : > { %v333_v46 = vadd.f32 %v332_v42, %v331_v38 }
  0x39   : > { %v386_v53 = vrot.slane %v385_v52, 2 }
  0x3a   : > { %v334_v48 = vrot.slane %v333_v46, 1 }
  0x3b   : > { %v387_v55 = vadd.f32 %v386_v53, %v385_v52 }
  0x3c   : > { %v335_v50 = vadd.f32 %v334_v48, %v333_v46 }
  0x3d   : > { %v388_v56 = vrot.slane %v387_v55, 1 }
  0x3e   : > { %v3572_v54 = vmul.f32 0.125, %v335_v50 }
  0x3f   : > { %v389_v58 = vadd.f32 %v388_v56, %v387_v55 }
  0x40   : > { %v391_v59 = vmul.f32 %v3572_v54, %v3572_v54  ;;  %v393_v0 = vsub.f32 %v3415_v2, %v3572_v54  ;;  %v394_v1 = vsub.f32 %v3420_v3, %v3572_v54  ;;  %v395_v6 = vsub.f32 %v3425_v4, %v3572_v54 }
  0x41   : > { %v390_v60 = vmul.f32 0.125, %v389_v58  ;;  %v396_v7 = vsub.f32 %v3430_v5, %v3572_v54  ;;  %v397_v8 = vsub.f32 %v3441_v9, %v3572_v54  ;;  %v398_v2 = vsub.f32 %v3448_v12, %v3572_v54 }
  0x42   : > { %v399_v3 = vsub.f32 %v3457_v16, %v3572_v54  ;;  %v400_v19 = vsub.f32 %v3468_v21, %v3572_v54  ;;  %v401_v24 = vsub.f32 %v3478_v26, %v3572_v54  ;;  %v402_v21 = vsub.f32 %v3489_v33, %v3572_v54 }
  0x43   : > { %v392_v61 = vsub.f32 %v390_v60, %v391_v59  ;;  %v403_v30 = vsub.f32 %v3499_v39, %v3572_v54  ;;  %v404_v35 = vsub.f32 %v3509_v45, %v3572_v54  ;;  %v405_v36 = vsub.f32 %v3519_v51, %v3572_v54 }
  0x44   : > { %v406_v42 = vsub.f32 %v3529_v57, %v3572_v54  ;;  %v407_v43 = vsub.f32 %v3539_v63, %v3572_v54  ;;  %v408_v49 = vsub.f32 %v3549_v10, %v3572_v54 }
  0x45   : > { %v409_v62 = vadd.f32 1e-05, %v392_v61 }
  0x47   : > { %3265 = vrsqrt.f32 %v409_v62 }
  0x51   : > { %v3586_v11 = vpop.eup %3265 }
  0x52   : > { %v411_v4 = vmul.f32 %v3586_v11, %v393_v0  ;;  %v412_v5 = vmul.f32 %v3586_v11, %v394_v1  ;;  %v413_v14 = vmul.f32 %v3586_v11, %v395_v6  ;;  %v414_v9 = vmul.f32 %v3586_v11, %v396_v7 }
  0x53   : > { %v415_v17 = vmul.f32 %v3586_v11, %v397_v8  ;;  %v416_v22 = vmul.f32 %v3586_v11, %v398_v2  ;;  %v417_v23 = vmul.f32 %v3586_v11, %v399_v3  ;;  %v418_v32 = vmul.f32 %v3586_v11, %v400_v19 }
  0x54   : > { %v434_v12 = vmul.f32 %v3591_v13, %v411_v4  ;;  %v435_v18 = vmul.f32 %v3591_v13, %v412_v5  ;;  %v436_v16 = vmul.f32 %v3591_v13, %v413_v14  ;;  %v437_v20 = vmul.f32 %v3591_v13, %v414_v9 }
  0x55   : > { %v438_v29 = vmul.f32 %v3591_v13, %v415_v17  ;;  %v439_v31 = vmul.f32 %v3591_v13, %v416_v22  ;;  %v440_v33 = vmul.f32 %v3591_v13, %v417_v23  ;;  %v419_v39 = vmul.f32 %v3586_v11, %v401_v24 }
  0x56   : > { %v458_v25 = vadd.f32 %v3604_v15, %v434_v12  ;;  %v459_v27 = vadd.f32 %v3604_v15, %v435_v18  ;;  %v460_v28 = vadd.f32 %v3604_v15, %v436_v16  ;;  %v461_v26 = vadd.f32 %v3604_v15, %v437_v20 }
  0x57   : > { %v462_v34 = vadd.f32 %v3604_v15, %v438_v29  ;;  %v463_v37 = vadd.f32 %v3604_v15, %v439_v31  ;;  %v441_v38 = vmul.f32 %v3591_v13, %v418_v32  ;;  %v420_v40 = vmul.f32 %v3586_v11, %v402_v21 }
  0x58   : > { %2929 = vmatprep.mubr.msk.f32.mxu0 %vm298_vm1, %v458_v25  ;;  %2955 = vmatprep.mubr.msk.f32.mxu1 %vm298_vm1, %v458_v25  ;;  %v464_v41 = vadd.f32 %v3604_v15, %v440_v33  ;;  %v442_v45 = vmul.f32 %v3591_v13, %v419_v39  ;;  %v421_v51 = vmul.f32 %v3586_v11, %v403_v30  ;;  %v3311_v7 = vmov 0.0  }
  0x59   : > { %2930 = vmatmul.mubr.msk.f32.vlgmr.msra.gmra.mrb[0].mxu0 %vm298_vm1, %v459_v27  ;;  %2956 = vmatmul.mubr.msk.f32.vlgmr.msra.gmra.mrb[0].mxu1 %vm298_vm1, %v459_v27  ;;  %v465_v44 = vadd.f32 %v3604_v15, %v441_v38  ;;  %v443_v46 = vmul.f32 %v3591_v13, %v420_v40  ;;  %v422_v47 = vmul.f32 %v3586_v11, %v404_v35 }
  0x5a   : > { %2932 = vmatprep.mubr.msk.f32.mxu0 %vm298_vm1, %v460_v28  ;;  %2958 = vmatprep.mubr.msk.f32.mxu1 %vm298_vm1, %v460_v28  ;;  %v466_v48 = vadd.f32 %v3604_v15, %v442_v45  ;;  %v444_v57 = vmul.f32 %v3591_v13, %v421_v51  ;;  %v423_v63 = vmul.f32 %v3586_v11, %v405_v36 }
  0x5b   : > { %v467_v50 = vadd.f32 %v3604_v15, %v443_v46  ;;  %v445_v52 = vmul.f32 %v3591_v13, %v422_v47  ;;  %v424_v53 = vmul.f32 %v3586_v11, %v406_v42  ;;  %v425_v10 = vmul.f32 %v3586_v11, %v407_v43  ;;  %855 = vst.msk [vmem:[%s4620_s7] sm:$0xff] %vm672_vm2, %v3311_v7 }
  0x5c   : > { %v468_v55 = vadd.f32 %v3604_v15, %v444_v57  ;;  %v446_v56 = vmul.f32 %v3591_v13, %v423_v63  ;;  %v426_v59 = vmul.f32 %v3586_v11, %v408_v49  ;;  %856 = vst.msk [vmem:[%s4620_s7 + $0x8] sm:$0xff] %vm672_vm2, %v3311_v7  ;;  %857 = vst.msk [vmem:[%s4620_s7 + $0x10] sm:$0xff] %vm672_vm2, %v3311_v7 }
  0x5d   : > { %2933 = vmatmul.mubr.msk.f32.gmra.mrb[2].mxu0 %vm298_vm1, %v461_v26  ;;  %2959 = vmatmul.mubr.msk.f32.gmra.mrb[2].mxu1 %vm298_vm1, %v461_v26  ;;  %v469_v54 = vadd.f32 %v3604_v15, %v445_v52  ;;  %v447_v58 = vmul.f32 %v3591_v13, %v424_v53  ;;  %v448_v61 = vmul.f32 %v3591_v13, %v425_v10 }
  0x5e   : > { %2935 = vmatprep.mubr.msk.f32.mxu0 %vm298_vm1, %v462_v34  ;;  %2961 = vmatprep.mubr.msk.f32.mxu1 %vm298_vm1, %v462_v34  ;;  %v470_v60 = vadd.f32 %v3604_v15, %v446_v56  ;;  %v449_v0 = vmul.f32 %v3591_v13, %v426_v59  ;;  %858 = vst.msk [vmem:[%s4620_s7 + $0x18] sm:$0xff] %vm672_vm2, %v3311_v7  ;;  %859 = vst.msk [vmem:[%s4620_s7 + $0x20] sm:$0xff] %vm672_vm2, %v3311_v7 }
  0x5f   : > { %v471_v62 = vadd.f32 %v3604_v15, %v447_v58  ;;  %v472_v1 = vadd.f32 %v3604_v15, %v448_v61  ;;  %860 = vst.msk [vmem:[%s4620_s7 + $0x28] sm:$0xff] %vm672_vm2, %v3311_v7  ;;  %861 = vst.msk [vmem:[%s4620_s7 + $0x30] sm:$0xff] %vm672_vm2, %v3311_v7 }
  0x60   : > { %v473_v6 = vadd.f32 %v3604_v15, %v449_v0  ;;  %862 = vst.msk [vmem:[%s4620_s7 + $0x38] sm:$0xff] %vm672_vm2, %v3311_v7  ;;  %863 = vst.msk [vmem:[%s4620_s7 + $0x40] sm:$0xff] %vm672_vm2, %v3311_v7 }
  0x61   : > { %2936 = vmatmul.mubr.msk.f32.gmra.mrb[4].mxu0 %vm298_vm1, %v463_v37  ;;  %2962 = vmatmul.mubr.msk.f32.gmra.mrb[4].mxu1 %vm298_vm1, %v463_v37  ;;  %864 = vst.msk [vmem:[%s4620_s7 + $0x48] sm:$0xff] %vm672_vm2, %v3311_v7  ;;  %865 = vst.msk [vmem:[%s4620_s7 + $0x50] sm:$0xff] %vm672_vm2, %v3311_v7 }
  0x62   : > { %2938 = vmatprep.mubr.msk.f32.mxu0 %vm298_vm1, %v464_v41  ;;  %2964 = vmatprep.mubr.msk.f32.mxu1 %vm298_vm1, %v464_v41  ;;  %866 = vst.msk [vmem:[%s4620_s7 + $0x58] sm:$0xff] %vm672_vm2, %v3311_v7  ;;  %867 = vst.msk [vmem:[%s4620_s7 + $0x60] sm:$0xff] %vm672_vm2, %v3311_v7 }
  0x63   : > { %868 = vst.msk [vmem:[%s4620_s7 + $0x68] sm:$0xff] %vm672_vm2, %v3311_v7  ;;  %869 = vst.msk [vmem:[%s4620_s7 + $0x70] sm:$0xff] %vm672_vm2, %v3311_v7 }
  0x64   : > { %870 = vst.msk [vmem:[%s4620_s7 + $0x78] sm:$0xff] %vm672_vm2, %v3311_v7 }
  0x65   : > { %2939 = vmatmul.mubr.msk.f32.gmra.mrb[6].mxu0 %vm298_vm1, %v465_v44  ;;  %2965 = vmatmul.mubr.msk.f32.gmra.mrb[6].mxu1 %vm298_vm1, %v465_v44 }
  0x66   : > { %2941 = vmatprep.mubr.msk.f32.mxu0 %vm298_vm1, %v466_v48  ;;  %2967 = vmatprep.mubr.msk.f32.mxu1 %vm298_vm1, %v466_v48 }
  0x69   : > { %2942 = vmatmul.mubr.msk.f32.gmra.mrb[8].mxu0 %vm298_vm1, %v467_v50  ;;  %2968 = vmatmul.mubr.msk.f32.gmra.mrb[8].mxu1 %vm298_vm1, %v467_v50 }
  0x6a   : > { %2944 = vmatprep.mubr.msk.f32.mxu0 %vm298_vm1, %v468_v55  ;;  %2970 = vmatprep.mubr.msk.f32.mxu1 %vm298_vm1, %v468_v55 }
  0x6d   : > { %2945 = vmatmul.mubr.msk.f32.gmra.mrb[10].mxu0 %vm298_vm1, %v469_v54  ;;  %2971 = vmatmul.mubr.msk.f32.gmra.mrb[10].mxu1 %vm298_vm1, %v469_v54 }
  0x6e   : > { %2947 = vmatprep.mubr.msk.f32.mxu0 %vm298_vm1, %v470_v60  ;;  %2973 = vmatprep.mubr.msk.f32.mxu1 %vm298_vm1, %v470_v60 }
  0x71   : > { %2948 = vmatmul.mubr.msk.f32.gmra.mrb[12].mxu0 %vm298_vm1, %v471_v62  ;;  %2974 = vmatmul.mubr.msk.f32.gmra.mrb[12].mxu1 %vm298_vm1, %v471_v62 }
  0x72   : > { %2950 = vmatprep.mubr.msk.f32.mxu0 %vm298_vm1, %v472_v1  ;;  %2976 = vmatprep.mubr.msk.f32.mxu1 %vm298_vm1, %v472_v1 }
  0x75   : > { %2951 = vmatmul.mubr.msk.f32.gmra.mrb[14].mxu0 %vm298_vm1, %v473_v6  ;;  %2977 = vmatmul.mubr.msk.f32.gmra.mrb[14].mxu1 %vm298_vm1, %v473_v6 }
 0x12c   : > { %v2931_v8 = vpop.f32.mrb[0].mxu0  ;;  %v2957_v11 = vpop.f32.mrb[0].mxu1 }
 0x12d   : > { %674 = vst.msk [vmem:[#allocation2 + $0x8] sm:$0xff] %vm672_vm2, %v2931_v8  ;;  %840 = vst.msk [vmem:[#allocation2 + $0x88] sm:$0xff] %vm672_vm2, %v2957_v11  ;;  %v593_v13 = vpop.f32.mrb[1].mxu0  ;;  %v760_v2 = vpop.f32.mrb[1].mxu1 }
 0x12e   : > { %673 = vst.msk [vmem:[#allocation2] sm:$0xff] %vm672_vm2, %v593_v13  ;;  %839 = vst.msk [vmem:[#allocation2 + $0x80] sm:$0xff] %vm672_vm2, %v760_v2 }
 0x130   : > { %v2934_v3 = vpop.f32.mrb[2].mxu0  ;;  %v2960_v4 = vpop.f32.mrb[2].mxu1 }
 0x131   : > { %676 = vst.msk [vmem:[#allocation2 + $0x18] sm:$0xff] %vm672_vm2, %v2934_v3  ;;  %842 = vst.msk [vmem:[#allocation2 + $0x98] sm:$0xff] %vm672_vm2, %v2960_v4  ;;  %v603_v5 = vpop.f32.mrb[3].mxu0  ;;  %v770_v14 = vpop.f32.mrb[3].mxu1 }
 0x132   : > { %675 = vst.msk [vmem:[#allocation2 + $0x10] sm:$0xff] %vm672_vm2, %v603_v5  ;;  %841 = vst.msk [vmem:[#allocation2 + $0x90] sm:$0xff] %vm672_vm2, %v770_v14 }
 0x134   : > { %v2937_v9 = vpop.f32.mrb[4].mxu0  ;;  %v2963_v15 = vpop.f32.mrb[4].mxu1 }
 0x135   : > { %678 = vst.msk [vmem:[#allocation2 + $0x28] sm:$0xff] %vm672_vm2, %v2937_v9  ;;  %844 = vst.msk [vmem:[#allocation2 + $0xa8] sm:$0xff] %vm672_vm2, %v2963_v15  ;;  %v613_v17 = vpop.f32.mrb[5].mxu0  ;;  %v780_v12 = vpop.f32.mrb[5].mxu1 }
 0x136   : > { %677 = vst.msk [vmem:[#allocation2 + $0x20] sm:$0xff] %vm672_vm2, %v613_v17  ;;  %843 = vst.msk [vmem:[#allocation2 + $0xa0] sm:$0xff] %vm672_vm2, %v780_v12 }
 0x138   : > { %v2940_v18 = vpop.f32.mrb[6].mxu0  ;;  %v2966_v16 = vpop.f32.mrb[6].mxu1 }
 0x139   : > { %680 = vst.msk [vmem:[#allocation2 + $0x38] sm:$0xff] %vm672_vm2, %v2940_v18  ;;  %846 = vst.msk [vmem:[#allocation2 + $0xb8] sm:$0xff] %vm672_vm2, %v2966_v16  ;;  %v623_v19 = vpop.f32.mrb[7].mxu0  ;;  %v790_v20 = vpop.f32.mrb[7].mxu1 }
 0x13a   : > { %679 = vst.msk [vmem:[#allocation2 + $0x30] sm:$0xff] %vm672_vm2, %v623_v19  ;;  %845 = vst.msk [vmem:[#allocation2 + $0xb0] sm:$0xff] %vm672_vm2, %v790_v20 }
 0x13c   : > { %v2943_v22 = vpop.f32.mrb[8].mxu0  ;;  %v2969_v23 = vpop.f32.mrb[8].mxu1 }
 0x13d   : > { %682 = vst.msk [vmem:[#allocation2 + $0x48] sm:$0xff] %vm672_vm2, %v2943_v22  ;;  %848 = vst.msk [vmem:[#allocation2 + $0xc8] sm:$0xff] %vm672_vm2, %v2969_v23  ;;  %v633_v24 = vpop.f32.mrb[9].mxu0  ;;  %v800_v25 = vpop.f32.mrb[9].mxu1 }
 0x13e   : > { %681 = vst.msk [vmem:[#allocation2 + $0x40] sm:$0xff] %vm672_vm2, %v633_v24  ;;  %847 = vst.msk [vmem:[#allocation2 + $0xc0] sm:$0xff] %vm672_vm2, %v800_v25 }
 0x140   : > { %v2946_v27 = vpop.f32.mrb[10].mxu0  ;;  %v2972_v28 = vpop.f32.mrb[10].mxu1 }
 0x141   : > { %684 = vst.msk [vmem:[#allocation2 + $0x58] sm:$0xff] %vm672_vm2, %v2946_v27  ;;  %850 = vst.msk [vmem:[#allocation2 + $0xd8] sm:$0xff] %vm672_vm2, %v2972_v28  ;;  %v643_v29 = vpop.f32.mrb[11].mxu0  ;;  %v810_v21 = vpop.f32.mrb[11].mxu1 }
 0x142   : > { %683 = vst.msk [vmem:[#allocation2 + $0x50] sm:$0xff] %vm672_vm2, %v643_v29  ;;  %849 = vst.msk [vmem:[#allocation2 + $0xd0] sm:$0xff] %vm672_vm2, %v810_v21 }
 0x144   : > { %v2949_v30 = vpop.f32.mrb[12].mxu0  ;;  %v2975_v26 = vpop.f32.mrb[12].mxu1 }
 0x145   : > { %686 = vst.msk [vmem:[#allocation2 + $0x68] sm:$0xff] %vm672_vm2, %v2949_v30  ;;  %852 = vst.msk [vmem:[#allocation2 + $0xe8] sm:$0xff] %vm672_vm2, %v2975_v26  ;;  %v653_v31 = vpop.f32.mrb[13].mxu0  ;;  %v820_v32 = vpop.f32.mrb[13].mxu1 }
 0x146   : > { %685 = vst.msk [vmem:[#allocation2 + $0x60] sm:$0xff] %vm672_vm2, %v653_v31  ;;  %851 = vst.msk [vmem:[#allocation2 + $0xe0] sm:$0xff] %vm672_vm2, %v820_v32 }
 0x148   : > { %v2952_v34 = vpop.f32.mrb[14].mxu0  ;;  %v2978_v33 = vpop.f32.mrb[14].mxu1 }
 0x149   : > { %688 = vst.msk [vmem:[#allocation2 + $0x78] sm:$0xff] %vm672_vm2, %v2952_v34  ;;  %854 = vst.msk [vmem:[#allocation2 + $0xf8] sm:$0xff] %vm672_vm2, %v2978_v33  ;;  %v663_v39 = vpop.f32.mrb[15].mxu0  ;;  %v830_v35 = vpop.f32.mrb[15].mxu1 }
 0x14a   : > { %687 = vst.msk [vmem:[#allocation2 + $0x70] sm:$0xff] %vm672_vm2, %v663_v39  ;;  %853 = vst.msk [vmem:[#allocation2 + $0xf0] sm:$0xff] %vm672_vm2, %v830_v35 }
 0x14b PF: > { %v890_v36 = vld [vmem:[#allocation2 + $0x80] sm:$0xff]  ;;  %v891_v37 = vld [vmem:[#allocation2 + $0x88] sm:$0xff]  ;;  %v892_v45 = vld [vmem:[#allocation2 + $0x90] sm:$0xff]  ;;  %p2660_p9 = scmp.ne.s32.totalorder %s3297_s25, 0 }
 0x14c   : > { %v874_v38 = vld [vmem:[#allocation2] sm:$0xff]  ;;  %v3139_v40 = vpack.c.bf16 %v891_v37, %v890_v36  ;;  %v875_v41 = vld [vmem:[#allocation2 + $0x8] sm:$0xff]  ;;  %v893_v51 = vld [vmem:[#allocation2 + $0x98] sm:$0xff]  ;;  %v3312_v26 = vmov (!%p2660_p9), 0.0|0.0   ;;  %vm3313_vm3 = vmmov (!%p2660_p9), 0   ;;  %v3314_v34 = vmov (!%p2660_p9), 0.0  }
 0x14d   : > { %v3141_v42 = vpack.c.bf16 %v875_v41, %v874_v38  ;;  %v3143_v43 = vpack.c.bf16 %v893_v51, %v892_v45  ;;  %v876_v44 = vld [vmem:[#allocation2 + $0x10] sm:$0xff]  ;;  %v877_v46 = vld [vmem:[#allocation2 + $0x18] sm:$0xff]  ;;  %v894_v47 = vld [vmem:[#allocation2 + $0xa0] sm:$0xff]  ;;  %3177 = vmatprep.subr.bf16.mxu1 (!%p2660_p9), %v3312_v26  ;;  %2998 = vmatprep.mubr.msk.f32.mxu1 (!%p2660_p9), %vm3313_vm3, %v3314_v34  ;;  %vm1000_vm4 = vcmask (!%p2660_p9), 261120   ;;  %vm1210_vm5 = vcmask (!%p2660_p9), 64512  }
 0x14e   : > { %3140 = vmatprep.subr.bf16.mxu0 %v3139_v40  ;;  %v895_v48 = vld [vmem:[#allocation2 + $0xa8] sm:$0xff]  ;;  %v3145_v57 = vpack.c.bf16 %v877_v46, %v876_v44  ;;  %v878_v49 = vld [vmem:[#allocation2 + $0x20] sm:$0xff]  ;;  %v896_v52 = vld [vmem:[#allocation2 + $0xb0] sm:$0xff] }
 0x14f   : > { %3142 = vmatpush3.bf16.msra.mxu0 %v3141_v42  ;;  %v3147_v63 = vpack.c.bf16 %v895_v48, %v894_v47  ;;  %v879_v50 = vld [vmem:[#allocation2 + $0x28] sm:$0xff]  ;;  %v897_v53 = vld [vmem:[#allocation2 + $0xb8] sm:$0xff]  ;;  %v880_v10 = vld [vmem:[#allocation2 + $0x30] sm:$0xff] }
 0x150   : > { %3144 = vmatprep.subr.bf16.mxu0 %v3143_v43  ;;  %v3149_v55 = vpack.c.bf16 %v879_v50, %v878_v49  ;;  %v3151_v56 = vpack.c.bf16 %v897_v53, %v896_v52  ;;  %v881_v54 = vld [vmem:[#allocation2 + $0x38] sm:$0xff]  ;;  %v898_v58 = vld [vmem:[#allocation2 + $0xc0] sm:$0xff]  ;;  %v899_v59 = vld [vmem:[#allocation2 + $0xc8] sm:$0xff] }
 0x151   : > { %v871_v60 = vld [vmem:[%s3404_s12] sm:$0xff]  ;;  %v3153_v62 = vpack.c.bf16 %v881_v54, %v880_v10  ;;  %v3155_v0 = vpack.c.bf16 %v899_v59, %v898_v58  ;;  %v883_v6 = vld [vmem:[#allocation2 + $0x48] sm:$0xff]  ;;  %v900_v7 = vld [vmem:[#allocation2 + $0xd0] sm:$0xff] }
 0x152   : > { %v873_v61 = vunpack.c.h.bf16 %v871_v60  ;;  %v882_v1 = vld [vmem:[#allocation2 + $0x40] sm:$0xff]  ;;  %v901_v8 = vld [vmem:[#allocation2 + $0xd8] sm:$0xff]  ;;  %v884_v2 = vld [vmem:[#allocation2 + $0x50] sm:$0xff]  ;;  %v3797_v24 = vunpack.c.l.bf16 %v871_v60 }
 0x153   : > { %3146 = vmatpush3.bf16.msra.mxu0 %v3145_v57  ;;  %v3157_v11 = vpack.c.bf16 %v883_v6, %v882_v1  ;;  %v3159_v13 = vpack.c.bf16 %v901_v8, %v900_v7  ;;  %v885_v3 = vld [vmem:[#allocation2 + $0x58] sm:$0xff]  ;;  %v902_v4 = vld [vmem:[#allocation2 + $0xe0] sm:$0xff]  ;;  %v903_v5 = vld [vmem:[#allocation2 + $0xe8] sm:$0xff] }
 0x154   : > { %3148 = vmatprep.subr.bf16.mxu0 %v3147_v63  ;;  %970 = vmatprep.mubr.f32.mxu0 %v873_v61  ;;  %v3161_v14 = vpack.c.bf16 %v885_v3, %v884_v2  ;;  %v3163_v9 = vpack.c.bf16 %v903_v5, %v902_v4  ;;  %v886_v15 = vld [vmem:[#allocation2 + $0x60] sm:$0xff]  ;;  %v887_v17 = vld [vmem:[#allocation2 + $0x68] sm:$0xff]  ;;  %v904_v12 = vld [vmem:[#allocation2 + $0xf0] sm:$0xff] }
 0x155   : > { %v905_v18 = vld [vmem:[#allocation2 + $0xf8] sm:$0xff]  ;;  %v3165_v16 = vpack.c.bf16 %v887_v17, %v886_v15  ;;  %v888_v20 = vld [vmem:[#allocation2 + $0x70] sm:$0xff]  ;;  %v988_v29 = vld [vmem:[%s4618_s5] sm:$0xff] (!%p2660_p9)  ;;  %1178 = vxpose.xlu0.b32.start.end [1/1] (short) (!%p2660_p9), %v3797_v24, 128 }
 0x156   : > { %v3167_v19 = vpack.c.bf16 %v905_v18, %v904_v12  ;;  %v889_v22 = vld [vmem:[#allocation2 + $0x78] sm:$0xff]  ;;  %v989_v21 = vld [vmem:[%s4618_s5 + $0x8] sm:$0xff] (!%p2660_p9)  ;;  %v990_v30 = vld [vmem:[%s4618_s5 + $0x10] sm:$0xff] (!%p2660_p9) }
 0x157   : > { %3150 = vmatpush3.bf16.msra.mxu0 %v3149_v55  ;;  %v3169_v23 = vpack.c.bf16 %v889_v22, %v888_v20  ;;  %v3172_v31 = vpack.c.bf16 (!%p2660_p9), %v989_v21, %v988_v29  ;;  %v991_v32 = vld [vmem:[%s4618_s5 + $0x18] sm:$0xff] (!%p2660_p9)  ;;  %v2661_v33 = vld [vmem:[%s4619_s6] ss:$0 sm:$0xff] (!%p2660_p9)  ;;  %v2666_v36 = vld [vmem:[%s4618_s5 + $0x28] sm:$0xff] (!%p2660_p9) }
 0x158   : > { %3152 = vmatprep.subr.bf16.mxu0 %v3151_v56  ;;  %v2665_v39 = vld [vmem:[%s4618_s5 + $0x20] sm:$0xff] (!%p2660_p9)  ;;  %v3175_v37 = vpack.c.bf16 (!%p2660_p9), %v991_v32, %v990_v30  ;;  %v2667_v41 = vld [vmem:[%s4618_s5 + $0x30] sm:$0xff] (!%p2660_p9)  ;;  %v2668_v45 = vld [vmem:[%s4618_s5 + $0x38] sm:$0xff] (!%p2660_p9) }
 0x159   : > { %v3178_v38 = vpack.c.bf16 (!%p2660_p9), %v2666_v36, %v2665_v39  ;;  %v3181_v51 = vpack.c.bf16 (!%p2660_p9), %v2668_v45, %v2667_v41  ;;  %v2663_v49 = vld [vmem:[%s4619_s6 + $0x1] ss:$0 sm:$0xff] (!%p2660_p9)  ;;  %v2670_v59 = vld [vmem:[%s4619_s6 + $0x2] ss:$0 sm:$0xff] (!%p2660_p9)  ;;  %v1164_v20 = vld [vmem:[%s4620_s7 + $0x10] sm:$0xff] (!%p2660_p9) }
 0x15a   : > { %v1162_v2 = vld [vmem:[%s4620_s7] sm:$0xff] (!%p2660_p9)  ;;  %v1172_v22 = vld [vmem:[%s4620_s7 + $0x50] sm:$0xff] (!%p2660_p9)  ;;  %v1167_v32 = vld [vmem:[%s4620_s7 + $0x28] sm:$0xff] (!%p2660_p9) }
 0x15b   : > { %3154 = vmatpush3.bf16.msra.mxu0 %v3153_v62  ;;  %3179 = vmatpush3.bf16.msra.mxu1 (!%p2660_p9), %v3178_v38  ;;  %v1170_v3 = vld [vmem:[%s4620_s7 + $0x40] sm:$0xff] (!%p2660_p9) }
 0x15c   : > { %3156 = vmatprep.subr.bf16.mxu0 %v3155_v0  ;;  %3180 = vmatprep.subr.bf16.mxu1 (!%p2660_p9), %v3312_v26  ;;  %v1174_v39 = vld [vmem:[%s4620_s7 + $0x60] sm:$0xff] (!%p2660_p9) }
 0x15f   : > { %3158 = vmatpush3.bf16.msra.mxu0 %v3157_v11  ;;  %3182 = vmatpush3.bf16.msra.mxu1 (!%p2660_p9), %v3181_v51  ;;  %v1163_v11 = vld [vmem:[%s4620_s7 + $0x8] sm:$0xff] (!%p2660_p9) }
 0x160   : > { %3160 = vmatprep.subr.bf16.mxu0 %v3159_v13  ;;  %v1171_v13 = vld [vmem:[%s4620_s7 + $0x48] sm:$0xff] (!%p2660_p9) }
 0x163   : > { %3162 = vmatpush3.bf16.msra.mxu0 %v3161_v14 }
 0x164   : > { %3164 = vmatprep.subr.bf16.mxu0 %v3163_v9 }
 0x167   : > { %3166 = vmatpush3.bf16.msra.mxu0 %v3165_v16  ;;  %v1165_v16 = vld [vmem:[%s4620_s7 + $0x18] sm:$0xff] (!%p2660_p9) }
 0x168   : > { %3168 = vmatprep.subr.bf16.mxu0 %v3167_v19  ;;  %v1173_v19 = vld [vmem:[%s4620_s7 + $0x58] sm:$0xff] (!%p2660_p9) }
 0x16b   : > { %3170 = vmatpush3.bf16.msra.mxu0 %v3169_v23 }
 0x16c   : > { %3171 = vmatprep.subr.bf16.mxu0 (!%p2660_p9), %v3312_v26 }
 0x16e   : > { %971 = vmatmul.mubr.f32.vlgmr.msra.gmra.mrb[0].mxu0 %v3797_v24 }
 0x16f   : > { %2987 = vmatprep.mubr.msk.f32.mxu0 (!%p2660_p9), %vm3313_vm3, %v3314_v34  ;;  %3173 = vmatpush3.bf16.msra.mxu0 (!%p2660_p9), %v3172_v31  ;;  %v1175_v34 = vld [vmem:[%s4620_s7 + $0x68] sm:$0xff] (!%p2660_p9) }
 0x170   : > { %3174 = vmatprep.subr.bf16.mxu0 (!%p2660_p9), %v3312_v26 }
 0x173   : > { %3176 = vmatpush3.bf16.msra.mxu0 (!%p2660_p9), %v3175_v37 }
 0x1d5   : > { %v1194_v42 = vpop.trf.xlu0 (!%p2660_p9) }
 0x1d9   : > { %v1195_v43 = vpop.trf.xlu0 (!%p2660_p9) }
 0x1dd   : > { %v1196_v44 = vpop.trf.xlu0 (!%p2660_p9) }
 0x1e1   : > { %v1197_v46 = vpop.trf.xlu0 (!%p2660_p9) }
 0x1e5   : > { %v1198_v47 = vpop.trf.xlu0 (!%p2660_p9) }
 0x1e9   : > { %v1199_v48 = vpop.trf.xlu0 (!%p2660_p9) }
 0x1ed   : > { %v1200_v57 = vpop.trf.xlu0 (!%p2660_p9) }
 0x1f1   : > { %v1201_v63 = vpop.trf.xlu0 (!%p2660_p9) }
 0x1f5   : > { %v1202_v56 = vpop.trf.xlu0 (!%p2660_p9) }
 0x1f9   : > { %v1203_v10 = vpop.trf.xlu0 (!%p2660_p9) }
 0x1fd   : > { %v1204_v54 = vpop.trf.xlu0 (!%p2660_p9) }
 0x201   : > { %v1205_v58 = vpop.trf.xlu0 (!%p2660_p9) }
 0x205   : > { %v1206_v60 = vpop.trf.xlu0 (!%p2660_p9) }
 0x209   : > { %v1207_v6 = vpop.trf.xlu0 (!%p2660_p9) }
 0x20d   : > { %v1208_v7 = vpop.trf.xlu0 (!%p2660_p9) }
 0x211   : > { %v1209_v8 = vpop.trf.xlu0 (!%p2660_p9) }
 0x23d   : > { %978 = sbr.rel (%p2660_p9) target bundleno = 1247 (0x4df), region = 56 }
 0x241   : > { %v2830_v25 = vpop.f32.mrb[0].mxu0 }
 0x242   : > { %v2831_v27 = vpop.f32.mrb[1].mxu0 }
 0x243   : > { %v3800_v28 = vadd.f32 %v2831_v27, %v2830_v25 }
 0x245   : > { %v986_v35 = vadd.f32 %v3800_v28, %v2661_v33  ;;  %v1166_v33 = vld [vmem:[%s4620_s7 + $0x20] sm:$0xff] }
 0x247   : > { %v987_v40 = vmax.f32 %v986_v35, 0.0 }
 0x249   : > { %2988 = vmatmul.mubr.msk.f32.vlgmr.msra.gmra.mrb[0].mxu0 %vm1000_vm4, %v987_v40 }
 0x24a   : > { %3003 = vmatprep.mubr.msk.f32.mxu0 %vm1210_vm5, %v1194_v42  ;;  %v1169_v42 = vld [vmem:[%s4620_s7 + $0x38] sm:$0xff] }
 0x31c   : > { %v1070_v50 = vpop.f32.mrb[0].mxu0 }
 0x31d   : > { %v1071_v52 = vadd.f32 %v2663_v49, %v1070_v50  ;;  %v2989_v53 = vpop.f32.mrb[1].mxu0 }
 0x31f   : > { %v1074_v55 = vmax.f32 %v1071_v52, 0.0 }
 0x321   : > { %2999 = vmatmul.mubr.msk.f32.vlgmr.msra.gmra.mrb[0].mxu1 %vm1000_vm4, %v1074_v55 }
 0x322   : > { %3015 = vmatprep.mubr.msk.f32.mxu1 %vm1210_vm5, %v1202_v56 }
 0x3f4   : > { %v1157_v61 = vpop.f32.mrb[0].mxu1 }
 0x3f5   : > { %v1158_v62 = vadd.f32 %v2670_v59, %v1157_v61  ;;  %v3000_v0 = vpop.f32.mrb[1].mxu1 }
 0x3f7   : > { %v1161_v1 = vmax.f32 %v1158_v62, 0.0 }
 0x3f9   : > { %3001 = vmatprep.subr.mxu0 %v1161_v1  ;;  %3211 = vmatprep.subr.mxu1 %v1161_v1 }
 0x3fa   : > { %3002 = vmatpush3.msra.mxu0 %v1161_v1  ;;  %3212 = vmatpush3.msra.mxu1 %v1161_v1 }
 0x3fb   : > { %3004 = vmatmul.mubr.msk.f32.vlgmr.msra.gmra.mrb[2].mxu0 %vm1210_vm5, %v1195_v43  ;;  %3016 = vmatmul.mubr.msk.f32.vlgmr.msra.gmra.mrb[2].mxu1 %vm1210_vm5, %v1203_v10  ;;  %v1177_v43 = vld [vmem:[%s4620_s7 + $0x78] sm:$0xff] }
 0x3fc   : > { %3006 = vmatprep.mubr.msk.f32.mxu0 %vm1210_vm5, %v1196_v44  ;;  %3018 = vmatprep.mubr.msk.f32.mxu1 %vm1210_vm5, %v1204_v54  ;;  %v1168_v44 = vld [vmem:[%s4620_s7 + $0x30] sm:$0xff] }
 0x3ff   : > { %3007 = vmatmul.mubr.msk.f32.gmra.mrb[4].mxu0 %vm1210_vm5, %v1197_v46  ;;  %3019 = vmatmul.mubr.msk.f32.gmra.mrb[4].mxu1 %vm1210_vm5, %v1205_v58  ;;  %v1176_v46 = vld [vmem:[%s4620_s7 + $0x70] sm:$0xff] }
 0x400   : > { %3009 = vmatprep.mubr.msk.f32.mxu0 %vm1210_vm5, %v1198_v47  ;;  %3021 = vmatprep.mubr.msk.f32.mxu1 %vm1210_vm5, %v1206_v60 }
 0x403   : > { %3010 = vmatmul.mubr.msk.f32.gmra.mrb[6].mxu0 %vm1210_vm5, %v1199_v48  ;;  %3022 = vmatmul.mubr.msk.f32.gmra.mrb[6].mxu1 %vm1210_vm5, %v1207_v6 }
 0x404   : > { %3012 = vmatprep.mubr.msk.f32.mxu0 %vm1210_vm5, %v1200_v57  ;;  %3024 = vmatprep.mubr.msk.f32.mxu1 %vm1210_vm5, %v1208_v7 }
 0x407   : > { %3013 = vmatmul.mubr.msk.f32.gmra.mrb[8].mxu0 %vm1210_vm5, %v1201_v63  ;;  %3025 = vmatmul.mubr.msk.f32.gmra.mrb[8].mxu1 %vm1210_vm5, %v1209_v8 }
 0x4ce   : > { %v3005_v4 = vpop.f32.mrb[2].mxu0  ;;  %v3017_v5 = vpop.f32.mrb[2].mxu1 }
 0x4cf   : > { %v1405_v14 = vadd.f32 %v3005_v4, %v1163_v11  ;;  %v1413_v9 = vadd.f32 %v3017_v5, %v1171_v13  ;;  %v1325_v15 = vpop.f32.mrb[3].mxu0  ;;  %v1365_v17 = vpop.f32.mrb[3].mxu1 }
 0x4d0   : > { %v1404_v12 = vadd.f32 %v1325_v15, %v1162_v2  ;;  %v1412_v18 = vadd.f32 %v1365_v17, %v1170_v3 }
 0x4d1   : > { %1421 = vst.msk [vmem:[%s4620_s7 + $0x8] sm:$0xff] %vm1000_vm4, %v1405_v14  ;;  %1429 = vst.msk [vmem:[%s4620_s7 + $0x48] sm:$0xff] %vm1000_vm4, %v1413_v9 }
 0x4d2   : > { %1420 = vst.msk [vmem:[%s4620_s7] sm:$0xff] %vm1000_vm4, %v1404_v12  ;;  %1428 = vst.msk [vmem:[%s4620_s7 + $0x40] sm:$0xff] %vm1000_vm4, %v1412_v18  ;;  %v3008_v23 = vpop.f32.mrb[4].mxu0  ;;  %v3020_v25 = vpop.f32.mrb[4].mxu1 }
 0x4d3   : > { %v1407_v27 = vadd.f32 %v3008_v23, %v1165_v16  ;;  %v1415_v29 = vadd.f32 %v3020_v25, %v1173_v19  ;;  %v1335_v21 = vpop.f32.mrb[5].mxu0  ;;  %v1375_v30 = vpop.f32.mrb[5].mxu1 }
 0x4d4   : > { %v1406_v26 = vadd.f32 %v1335_v21, %v1164_v20  ;;  %v1414_v31 = vadd.f32 %v1375_v30, %v1172_v22 }
 0x4d5   : > { %1423 = vst.msk [vmem:[%s4620_s7 + $0x18] sm:$0xff] %vm1000_vm4, %v1407_v27  ;;  %1431 = vst.msk [vmem:[%s4620_s7 + $0x58] sm:$0xff] %vm1000_vm4, %v1415_v29 }
 0x4d6   : > { %1422 = vst.msk [vmem:[%s4620_s7 + $0x10] sm:$0xff] %vm1000_vm4, %v1406_v26  ;;  %1430 = vst.msk [vmem:[%s4620_s7 + $0x50] sm:$0xff] %vm1000_vm4, %v1414_v31  ;;  %v3011_v35 = vpop.f32.mrb[6].mxu0  ;;  %v3023_v36 = vpop.f32.mrb[6].mxu1 }
 0x4d7   : > { %v1409_v37 = vadd.f32 %v3011_v35, %v1167_v32  ;;  %v1417_v38 = vadd.f32 %v3023_v36, %v1175_v34  ;;  %v1345_v40 = vpop.f32.mrb[7].mxu0  ;;  %v1385_v41 = vpop.f32.mrb[7].mxu1 }
 0x4d8   : > { %v1408_v45 = vadd.f32 %v1345_v40, %v1166_v33  ;;  %v1416_v51 = vadd.f32 %v1385_v41, %v1174_v39 }
 0x4d9   : > { %1425 = vst.msk [vmem:[%s4620_s7 + $0x28] sm:$0xff] %vm1000_vm4, %v1409_v37  ;;  %1433 = vst.msk [vmem:[%s4620_s7 + $0x68] sm:$0xff] %vm1000_vm4, %v1417_v38 }
 0x4da   : > { %1424 = vst.msk [vmem:[%s4620_s7 + $0x20] sm:$0xff] %vm1000_vm4, %v1408_v45  ;;  %1432 = vst.msk [vmem:[%s4620_s7 + $0x60] sm:$0xff] %vm1000_vm4, %v1416_v51  ;;  %v3014_v47 = vpop.f32.mrb[8].mxu0  ;;  %v3026_v48 = vpop.f32.mrb[8].mxu1 }
 0x4db   : > { %v1411_v57 = vadd.f32 %v3014_v47, %v1169_v42  ;;  %v1355_v63 = vpop.f32.mrb[9].mxu0  ;;  %v1419_v49 = vadd.f32 %v3026_v48, %v1177_v43  ;;  %v1395_v50 = vpop.f32.mrb[9].mxu1 }
 0x4dc   : > { %v1410_v52 = vadd.f32 %v1355_v63, %v1168_v44  ;;  %v1418_v53 = vadd.f32 %v1395_v50, %v1176_v46 }
 0x4dd   : > { %1427 = vst.msk [vmem:[%s4620_s7 + $0x38] sm:$0xff] %vm1000_vm4, %v1411_v57  ;;  %1435 = vst.msk [vmem:[%s4620_s7 + $0x78] sm:$0xff] %vm1000_vm4, %v1419_v49 }
 0x4de   : > { %1426 = vst.msk [vmem:[%s4620_s7 + $0x30] sm:$0xff] %vm1000_vm4, %v1410_v52  ;;  %1434 = vst.msk [vmem:[%s4620_s7 + $0x70] sm:$0xff] %vm1000_vm4, %v1418_v53 }
 0x4df PF: > { %p1436_p10 = scmp.eq.s32.totalorder %s3297_s25, 1  ;;  %p2688_p11 = scmp.ne.s32.totalorder %s3297_s25, 1 }
 0x4e0   : > { %v2691_v55 = vld [vmem:[%s4618_s5 + $0x40] sm:$0xff] (!%p2688_p11)  ;;  %v2692_v56 = vld [vmem:[%s4618_s5 + $0x48] sm:$0xff] (!%p2688_p11)  ;;  %v2693_v10 = vld [vmem:[%s4618_s5 + $0x50] sm:$0xff] (!%p2688_p11)  ;;  %1640 = vxpose.xlu0.b32.start.end [1/1] (short) (!%p2688_p11), %v3797_v24, 128  ;;  %v3315_v54 = vmov (!%p2688_p11), 0.0|0.0   ;;  %vm3316_vm6 = vmmov (!%p2688_p11), 0   ;;  %v3317_v60 = vmov (!%p2688_p11), 0.0  }
 0x4e1   : > { %1439 = sbr.rel (%p2688_p11) target bundleno = 1918 (0x77e), region = 60  ;;  %3183 = vmatprep.subr.bf16.mxu0 (!%p2688_p11), %v3315_v54  ;;  %v3184_v58 = vpack.c.bf16 (!%p2688_p11), %v2692_v56, %v2691_v55  ;;  %v2694_v59 = vld [vmem:[%s4618_s5 + $0x58] sm:$0xff] (!%p2688_p11)  ;;  %3035 = vmatprep.mubr.msk.f32.mxu0 (!%p2688_p11), %vm3316_vm6, %v3317_v60  ;;  %v2690_v61 = vld [vmem:[%s4619_s6 + $0x3] ss:$0 sm:$0xff] (!%p2688_p11)  ;;  %v2699_v0 = vld [vmem:[%s4618_s5 + $0x68] sm:$0xff] (!%p2688_p11)  ;;  %vm1463_vm7 = vcmask (!%p2688_p11), 261120  }
 0x4e2   : > { %v2698_v62 = vld [vmem:[%s4618_s5 + $0x60] sm:$0xff] (!%p2688_p11)  ;;  %v1448_v24 = vadd.f32 (!%p2688_p11), %v3800_v28, %v2690_v61  ;;  %3189 = vmatprep.subr.bf16.mxu1 (!%p2688_p11), %v3315_v54  ;;  %3046 = vmatprep.mubr.msk.f32.mxu1 (!%p2688_p11), %vm3316_vm6, %v3317_v60  ;;  %v3187_v1 = vpack.c.bf16 (!%p2688_p11), %v2694_v59, %v2693_v10  ;;  %v2700_v28 = vld [vmem:[%s4618_s5 + $0x70] sm:$0xff] (!%p2688_p11)  ;;  %v2701_v8 = vld [vmem:[%s4618_s5 + $0x78] sm:$0xff] (!%p2688_p11)  ;;  %vm1672_vm8 = vcmask (!%p2688_p11), 64512  }
 0x4e3   : > { %3185 = vmatpush3.bf16.msra.mxu0 (!%p2688_p11), %v3184_v58  ;;  %v3190_v6 = vpack.c.bf16 (!%p2688_p11), %v2699_v0, %v2698_v62  ;;  %v3193_v11 = vpack.c.bf16 (!%p2688_p11), %v2701_v8, %v2700_v28  ;;  %v2696_v17 = vld [vmem:[%s4619_s6 + $0x4] ss:$0 sm:$0xff] (!%p2688_p11)  ;;  %v2703_v29 = vld [vmem:[%s4619_s6 + $0x5] ss:$0 sm:$0xff] (!%p2688_p11)  ;;  %v1625_v33 = vld [vmem:[%s4620_s7 + $0x8] sm:$0xff] (!%p2688_p11) }
 0x4e4   : > { %3186 = vmatprep.subr.bf16.mxu0 (!%p2688_p11), %v3315_v54  ;;  %v1449_v7 = vmax.f32 (!%p2688_p11), %v1448_v24, 0.0  ;;  %v1633_v39 = vld [vmem:[%s4620_s7 + $0x48] sm:$0xff] (!%p2688_p11)  ;;  %v1624_v35 = vld [vmem:[%s4620_s7] sm:$0xff] (!%p2688_p11)  ;;  %v1627_v44 = vld [vmem:[%s4620_s7 + $0x18] sm:$0xff] (!%p2688_p11) }
 0x4e5   : > { %3191 = vmatpush3.bf16.msra.mxu1 (!%p2688_p11), %v3190_v6  ;;  %v1632_v36 = vld [vmem:[%s4620_s7 + $0x40] sm:$0xff] (!%p2688_p11)  ;;  %v1635_v46 = vld [vmem:[%s4620_s7 + $0x58] sm:$0xff] (!%p2688_p11)  ;;  %v1626_v47 = vld [vmem:[%s4620_s7 + $0x10] sm:$0xff] (!%p2688_p11) }
 0x4e6   : > { %3192 = vmatprep.subr.bf16.mxu1 (!%p2688_p11), %v3315_v54  ;;  %v1634_v48 = vld [vmem:[%s4620_s7 + $0x50] sm:$0xff] (!%p2688_p11)  ;;  %v1629_v10 = vld [vmem:[%s4620_s7 + $0x28] sm:$0xff] (!%p2688_p11)  ;;  %v1628_v58 = vld [vmem:[%s4620_s7 + $0x20] sm:$0xff] (!%p2688_p11) }
 0x4e7   : > { %3188 = vmatpush3.bf16.msra.mxu0 (!%p2688_p11), %v3187_v1  ;;  %v1637_v54 = vld [vmem:[%s4620_s7 + $0x68] sm:$0xff] (!%p2688_p11)  ;;  %v1636_v59 = vld [vmem:[%s4620_s7 + $0x60] sm:$0xff] (!%p2688_p11)  ;;  %v1631_v28 = vld [vmem:[%s4620_s7 + $0x38] sm:$0xff] (!%p2688_p11) }
 0x4e8   : > { %v1639_v8 = vld [vmem:[%s4620_s7 + $0x78] sm:$0xff] }
 0x4e9   : > { %3194 = vmatpush3.bf16.msra.mxu1 %v3193_v11  ;;  %v1630_v11 = vld [vmem:[%s4620_s7 + $0x30] sm:$0xff] }
 0x4ea   : > { %3036 = vmatmul.mubr.msk.f32.vlgmr.msra.gmra.mrb[0].mxu0 %vm1463_vm7, %v1449_v7 }
 0x560   : > { %v1656_v13 = vpop.trf.xlu0 }
 0x561   : > { %3051 = vmatprep.mubr.msk.f32.mxu0 %vm1672_vm8, %v1656_v13  ;;  %v1638_v13 = vld [vmem:[%s4620_s7 + $0x70] sm:$0xff] }
 0x564   : > { %v1657_v2 = vpop.trf.xlu0 }
 0x568   : > { %v1658_v3 = vpop.trf.xlu0 }
 0x56c   : > { %v1659_v4 = vpop.trf.xlu0 }
 0x570   : > { %v1660_v5 = vpop.trf.xlu0 }
 0x574   : > { %v1661_v14 = vpop.trf.xlu0 }
 0x578   : > { %v1662_v9 = vpop.trf.xlu0 }
 0x57c   : > { %v1663_v15 = vpop.trf.xlu0 }
 0x580   : > { %v1664_v20 = vpop.trf.xlu0 }
 0x584   : > { %v1665_v22 = vpop.trf.xlu0 }
 0x588   : > { %v1666_v23 = vpop.trf.xlu0 }
 0x58c   : > { %v1667_v25 = vpop.trf.xlu0 }
 0x590   : > { %v1668_v27 = vpop.trf.xlu0 }
 0x594   : > { %v1669_v31 = vpop.trf.xlu0 }
 0x598   : > { %v1670_v32 = vpop.trf.xlu0 }
 0x59c   : > { %v1671_v34 = vpop.trf.xlu0 }
 0x5bd   : > { %v1533_v12 = vpop.f32.mrb[0].mxu0 }
 0x5be   : > { %v1534_v18 = vadd.f32 %v2696_v17, %v1533_v12  ;;  %v3037_v16 = vpop.f32.mrb[1].mxu0 }
 0x5c0   : > { %v1537_v19 = vmax.f32 %v1534_v18, 0.0 }
 0x5c2   : > { %3047 = vmatmul.mubr.msk.f32.vlgmr.msra.gmra.mrb[0].mxu1 %vm1463_vm7, %v1537_v19 }
 0x5c3   : > { %3063 = vmatprep.mubr.msk.f32.mxu1 %vm1672_vm8, %v1664_v20 }
 0x695   : > { %v1620_v21 = vpop.f32.mrb[0].mxu1 }
 0x696   : > { %v1621_v30 = vadd.f32 %v2703_v29, %v1620_v21  ;;  %v3048_v26 = vpop.f32.mrb[1].mxu1 }
 0x698   : > { %3049 = vmatprep.subr.mxu0 %v1621_v30  ;;  %3213 = vmatprep.subr.mxu1 %v1621_v30 }
 0x699   : > { %3050 = vmatpush3.msra.mxu0 %v1621_v30  ;;  %3214 = vmatpush3.msra.mxu1 %v1621_v30 }
 0x69a   : > { %3052 = vmatmul.mubr.msk.f32.vlgmr.msra.gmra.mrb[2].mxu0 %vm1672_vm8, %v1657_v2  ;;  %3064 = vmatmul.mubr.msk.f32.vlgmr.msra.gmra.mrb[2].mxu1 %vm1672_vm8, %v1665_v22 }
 0x69b   : > { %3054 = vmatprep.mubr.msk.f32.mxu0 %vm1672_vm8, %v1658_v3  ;;  %3066 = vmatprep.mubr.msk.f32.mxu1 %vm1672_vm8, %v1666_v23 }
 0x69e   : > { %3055 = vmatmul.mubr.msk.f32.gmra.mrb[4].mxu0 %vm1672_vm8, %v1659_v4  ;;  %3067 = vmatmul.mubr.msk.f32.gmra.mrb[4].mxu1 %vm1672_vm8, %v1667_v25 }
 0x69f   : > { %3057 = vmatprep.mubr.msk.f32.mxu0 %vm1672_vm8, %v1660_v5  ;;  %3069 = vmatprep.mubr.msk.f32.mxu1 %vm1672_vm8, %v1668_v27 }
 0x6a2   : > { %3058 = vmatmul.mubr.msk.f32.gmra.mrb[6].mxu0 %vm1672_vm8, %v1661_v14  ;;  %3070 = vmatmul.mubr.msk.f32.gmra.mrb[6].mxu1 %vm1672_vm8, %v1669_v31 }
 0x6a3   : > { %3060 = vmatprep.mubr.msk.f32.mxu0 %vm1672_vm8, %v1662_v9  ;;  %3072 = vmatprep.mubr.msk.f32.mxu1 %vm1672_vm8, %v1670_v32 }
 0x6a6   : > { %3061 = vmatmul.mubr.msk.f32.gmra.mrb[8].mxu0 %vm1672_vm8, %v1663_v15  ;;  %3073 = vmatmul.mubr.msk.f32.gmra.mrb[8].mxu1 %vm1672_vm8, %v1671_v34 }
 0x76d   : > { %v3053_v37 = vpop.f32.mrb[2].mxu0  ;;  %v3065_v38 = vpop.f32.mrb[2].mxu1 }
 0x76e   : > { %v1867_v40 = vadd.f32 %v3053_v37, %v1625_v33  ;;  %v1875_v41 = vadd.f32 %v3065_v38, %v1633_v39  ;;  %v1787_v45 = vpop.f32.mrb[3].mxu0  ;;  %v1827_v51 = vpop.f32.mrb[3].mxu1 }
 0x76f   : > { %v1866_v42 = vadd.f32 %v1787_v45, %v1624_v35  ;;  %v1874_v43 = vadd.f32 %v1827_v51, %v1632_v36 }
 0x770   : > { %1883 = vst.msk [vmem:[%s4620_s7 + $0x8] sm:$0xff] %vm1463_vm7, %v1867_v40  ;;  %1891 = vst.msk [vmem:[%s4620_s7 + $0x48] sm:$0xff] %vm1463_vm7, %v1875_v41 }
 0x771   : > { %1882 = vst.msk [vmem:[%s4620_s7] sm:$0xff] %vm1463_vm7, %v1866_v42  ;;  %1890 = vst.msk [vmem:[%s4620_s7 + $0x40] sm:$0xff] %vm1463_vm7, %v1874_v43  ;;  %v3056_v57 = vpop.f32.mrb[4].mxu0  ;;  %v3068_v63 = vpop.f32.mrb[4].mxu1 }
 0x772   : > { %v1869_v49 = vadd.f32 %v3056_v57, %v1627_v44  ;;  %v1877_v50 = vadd.f32 %v3068_v63, %v1635_v46  ;;  %v1797_v52 = vpop.f32.mrb[5].mxu0  ;;  %v1837_v53 = vpop.f32.mrb[5].mxu1 }
 0x773   : > { %v1868_v55 = vadd.f32 %v1797_v52, %v1626_v47  ;;  %v1876_v56 = vadd.f32 %v1837_v53, %v1634_v48 }
 0x774   : > { %1885 = vst.msk [vmem:[%s4620_s7 + $0x18] sm:$0xff] %vm1463_vm7, %v1869_v49  ;;  %1893 = vst.msk [vmem:[%s4620_s7 + $0x58] sm:$0xff] %vm1463_vm7, %v1877_v50 }
 0x775   : > { %1884 = vst.msk [vmem:[%s4620_s7 + $0x10] sm:$0xff] %vm1463_vm7, %v1868_v55  ;;  %1892 = vst.msk [vmem:[%s4620_s7 + $0x50] sm:$0xff] %vm1463_vm7, %v1876_v56  ;;  %v3059_v60 = vpop.f32.mrb[6].mxu0  ;;  %v3071_v61 = vpop.f32.mrb[6].mxu1 }
 0x776   : > { %v1871_v62 = vadd.f32 %v3059_v60, %v1629_v10  ;;  %v1879_v24 = vadd.f32 %v3071_v61, %v1637_v54  ;;  %v1807_v0 = vpop.f32.mrb[7].mxu0  ;;  %v1847_v1 = vpop.f32.mrb[7].mxu1 }
 0x777   : > { %v1870_v6 = vadd.f32 %v1807_v0, %v1628_v58  ;;  %v1878_v7 = vadd.f32 %v1847_v1, %v1636_v59 }
 0x778   : > { %1887 = vst.msk [vmem:[%s4620_s7 + $0x28] sm:$0xff] %vm1463_vm7, %v1871_v62  ;;  %1895 = vst.msk [vmem:[%s4620_s7 + $0x68] sm:$0xff] %vm1463_vm7, %v1879_v24 }
 0x779   : > { %1886 = vst.msk [vmem:[%s4620_s7 + $0x20] sm:$0xff] %vm1463_vm7, %v1870_v6  ;;  %1894 = vst.msk [vmem:[%s4620_s7 + $0x60] sm:$0xff] %vm1463_vm7, %v1878_v7  ;;  %v3062_v2 = vpop.f32.mrb[8].mxu0  ;;  %v3074_v3 = vpop.f32.mrb[8].mxu1 }
 0x77a   : > { %v1873_v4 = vadd.f32 %v3062_v2, %v1631_v28  ;;  %v1817_v5 = vpop.f32.mrb[9].mxu0  ;;  %v1881_v14 = vadd.f32 %v3074_v3, %v1639_v8  ;;  %v1857_v9 = vpop.f32.mrb[9].mxu1 }
 0x77b   : > { %v1872_v15 = vadd.f32 %v1817_v5, %v1630_v11  ;;  %v1880_v17 = vadd.f32 %v1857_v9, %v1638_v13 }
 0x77c   : > { %1889 = vst.msk [vmem:[%s4620_s7 + $0x38] sm:$0xff] %vm1463_vm7, %v1873_v4  ;;  %1897 = vst.msk [vmem:[%s4620_s7 + $0x78] sm:$0xff] %vm1463_vm7, %v1881_v14 }
 0x77d   : > { %1888 = vst.msk [vmem:[%s4620_s7 + $0x30] sm:$0xff] %vm1463_vm7, %v1872_v15  ;;  %1896 = vst.msk [vmem:[%s4620_s7 + $0x70] sm:$0xff] %vm1463_vm7, %v1880_v17 }
 0x77e PF: > { %p1898_p12 = scmp.eq.s32.totalorder %s3293_s24, 1 }
 0x780   : > { %p1899_p13 = pnand %p1898_p12, %p276_p6 }
 0x781   : > { %v1921_v12 = vld [vmem:[%s4615_s2 + $0x10] sm:$0xff] (!%p1899_p13)  ;;  %v1919_v18 = vld [vmem:[%s4615_s2] sm:$0xff] (!%p1899_p13)  ;;  %v3318_v16 = vmov (!%p1899_p13), 0   ;;  %v1922_v19 = vld [vmem:[%s4615_s2 + $0x18] sm:$0xff] (!%p1899_p13)  ;;  %vm2036_vm9 = vcmask (!%p1899_p13), 261120   ;;  %v3319_v32 = vmov (!%p1899_p13), 0.0  }
 0x782   : > { %1902 = sbr.rel (%p1899_p13) target bundleno = 2299 (0x8fb), region = 64  ;;  %3268 = vset.pattern.permute.xlu1 (!%p1899_p13), %v3318_v16  ;;  %3267 = vset.pattern.permute.xlu0 (!%p1899_p13), %v3318_v16  ;;  %v1920_v20 = vld [vmem:[%s4615_s2 + $0x8] sm:$0xff] (!%p1899_p13)  ;;  %v1923_v23 = vld [vmem:[%s4615_s2 + $0x20] sm:$0xff] (!%p1899_p13)  ;;  %v4173_v26 = vld [vmem:[%s4620_s7 + $0x10] sm:$0xff] (!%p1899_p13) }
 0x783   : > { %1947 = vperm.xlu1 (!%p1899_p13), %3268, %v1921_v12   ;;  %1937 = vperm.xlu0 (!%p1899_p13), %3267, %v1919_v18   ;;  %v1924_v22 = vld [vmem:[%s4615_s2 + $0x28] sm:$0xff] (!%p1899_p13)  ;;  %v2721_v25 = vld [vmem:[%s4618_s5 + $0x80] sm:$0xff] (!%p1899_p13)  ;;  %2414 = vst.msk [vmem:[%s4620_s7 + $0x10] sm:$0xff] (!%p1899_p13), %vm2036_vm9, %v3319_v32  ;;  %v2723_v33 = vld [vmem:[%s4618_s5 + $0x90] sm:$0xff] (!%p1899_p13) }
 0x784   : > { %v2722_v27 = vld [vmem:[%s4618_s5 + $0x88] sm:$0xff] (!%p1899_p13)  ;;  %v2741_v21 = vld [vmem:[%s4618_s5 + $0xa0] sm:$0xff] (!%p1899_p13)  ;;  %v2724_v39 = vld [vmem:[%s4618_s5 + $0x98] sm:$0xff] (!%p1899_p13) }
 0x785   : > { %v3195_v29 = vpack.c.bf16 (!%p1899_p13), %v2722_v27, %v2721_v25  ;;  %v2742_v30 = vld [vmem:[%s4618_s5 + $0xa8] sm:$0xff] (!%p1899_p13)  ;;  %v4183_v34 = vld [vmem:[%s4620_s7] sm:$0xff] (!%p1899_p13)  ;;  %v3199_v35 = vpack.c.bf16 (!%p1899_p13), %v2724_v39, %v2723_v33  ;;  %v2743_v36 = vld [vmem:[%s4618_s5 + $0xb0] sm:$0xff] (!%p1899_p13) }
 0x786   : > { %v3203_v31 = vpack.c.bf16 (!%p1899_p13), %v2742_v30, %v2741_v21  ;;  %2412 = vst.msk [vmem:[%s4620_s7] sm:$0xff] (!%p1899_p13), %vm2036_vm9, %v3319_v32  ;;  %v2744_v37 = vld [vmem:[%s4618_s5 + $0xb8] sm:$0xff] (!%p1899_p13)  ;;  %v1904_v41 = vld [vmem:[%s4620_s7 + $0x8] sm:$0xff] (!%p1899_p13)  ;;  %v4223_v51 = vld [vmem:[%s4620_s7 + $0x20] sm:$0xff] (!%p1899_p13) }
 0x787   : > { %1952 = vperm.xlu1 (!%p1899_p13), %3268, %v1922_v19   ;;  %1942 = vperm.xlu0 (!%p1899_p13), %3267, %v1920_v20   ;;  %v4205_v38 = vld [vmem:[%s4620_s7 + $0x18] sm:$0xff] (!%p1899_p13)  ;;  %v3207_v40 = vpack.c.bf16 (!%p1899_p13), %v2744_v37, %v2743_v36  ;;  %v4218_v45 = vld [vmem:[%s4620_s7 + $0x28] sm:$0xff] (!%p1899_p13)  ;;  %2413 = vst.msk [vmem:[%s4620_s7 + $0x8] sm:$0xff] (!%p1899_p13), %vm2036_vm9, %v3319_v32  ;;  %2416 = vst.msk [vmem:[%s4620_s7 + $0x20] sm:$0xff] (!%p1899_p13), %vm2036_vm9, %v3319_v32 }
 0x788   : > { %3196 = vmatprep.subr.bf16.mxu0 (!%p1899_p13), %v3195_v29  ;;  %3204 = vmatprep.subr.bf16.mxu1 (!%p1899_p13), %v3203_v31  ;;  %2415 = vst.msk [vmem:[%s4620_s7 + $0x18] sm:$0xff] (!%p1899_p13), %vm2036_vm9, %v3319_v32  ;;  %2417 = vst.msk [vmem:[%s4620_s7 + $0x28] sm:$0xff] (!%p1899_p13), %vm2036_vm9, %v3319_v32  ;;  %v1926_v42 = vld [vmem:[%s4615_s2 + $0x38] sm:$0xff] (!%p1899_p13)  ;;  %v1925_v43 = vld [vmem:[%s4615_s2 + $0x30] sm:$0xff] (!%p1899_p13) }
 0x789   : > { %3198 = vmatpush3.bf16.msra.mxu0 %v3195_v29  ;;  %3206 = vmatpush3.bf16.msra.mxu1 %v3203_v31  ;;  %v4249_v44 = vld [vmem:[%s4620_s7 + $0x38] sm:$0xff]  ;;  %v1909_v46 = vld [vmem:[%s4620_s7 + $0x30] sm:$0xff]  ;;  %v1928_v47 = vld [vmem:[%s4615_s2 + $0x48] sm:$0xff] }
 0x78a   : > { %3200 = vmatprep.subr.bf16.mxu0 %v3199_v35  ;;  %3208 = vmatprep.subr.bf16.mxu1 %v3207_v40  ;;  %2419 = vst.msk [vmem:[%s4620_s7 + $0x38] sm:$0xff] %vm2036_vm9, %v3319_v32  ;;  %2418 = vst.msk [vmem:[%s4620_s7 + $0x30] sm:$0xff] %vm2036_vm9, %v3319_v32  ;;  %v1927_v48 = vld [vmem:[%s4615_s2 + $0x40] sm:$0xff]  ;;  %v4273_v57 = vld [vmem:[%s4620_s7 + $0x48] sm:$0xff] }
 0x78b   : > { %1962 = vperm.xlu1 %3268, %v1924_v22   ;;  %1957 = vperm.xlu0 %3267, %v1923_v23   ;;  %v1911_v63 = vld [vmem:[%s4620_s7 + $0x40] sm:$0xff]  ;;  %2421 = vst.msk [vmem:[%s4620_s7 + $0x48] sm:$0xff] %vm2036_vm9, %v3319_v32  ;;  %v1930_v49 = vld [vmem:[%s4615_s2 + $0x58] sm:$0xff]  ;;  %v1929_v50 = vld [vmem:[%s4615_s2 + $0x50] sm:$0xff] }
 0x78c   : > { %2420 = vst.msk [vmem:[%s4620_s7 + $0x40] sm:$0xff] %vm2036_vm9, %v3319_v32  ;;  %v4297_v52 = vld [vmem:[%s4620_s7 + $0x58] sm:$0xff]  ;;  %v1913_v53 = vld [vmem:[%s4620_s7 + $0x50] sm:$0xff]  ;;  %v1932_v55 = vld [vmem:[%s4615_s2 + $0x68] sm:$0xff] }
 0x78d   : > { %3202 = vmatpush3.bf16.msra.mxu0 %v3199_v35  ;;  %3210 = vmatpush3.bf16.msra.mxu1 %v3207_v40  ;;  %2423 = vst.msk [vmem:[%s4620_s7 + $0x58] sm:$0xff] %vm2036_vm9, %v3319_v32  ;;  %2422 = vst.msk [vmem:[%s4620_s7 + $0x50] sm:$0xff] %vm2036_vm9, %v3319_v32  ;;  %v1931_v56 = vld [vmem:[%s4615_s2 + $0x60] sm:$0xff]  ;;  %v4321_v10 = vld [vmem:[%s4620_s7 + $0x68] sm:$0xff] }
 0x78e   : > { %v1915_v54 = vld [vmem:[%s4620_s7 + $0x60] sm:$0xff]  ;;  %2425 = vst.msk [vmem:[%s4620_s7 + $0x68] sm:$0xff] %vm2036_vm9, %v3319_v32  ;;  %v1934_v58 = vld [vmem:[%s4615_s2 + $0x78] sm:$0xff]  ;;  %v1933_v59 = vld [vmem:[%s4615_s2 + $0x70] sm:$0xff] }
 0x78f   : > { %1972 = vperm.xlu1 %3268, %v1926_v42   ;;  %1967 = vperm.xlu0 %3267, %v1925_v43   ;;  %2424 = vst.msk [vmem:[%s4620_s7 + $0x60] sm:$0xff] %vm2036_vm9, %v3319_v32  ;;  %v4345_v60 = vld [vmem:[%s4620_s7 + $0x78] sm:$0xff]  ;;  %v1917_v61 = vld [vmem:[%s4620_s7 + $0x70] sm:$0xff] }
 0x790   : > { %2427 = vst.msk [vmem:[%s4620_s7 + $0x78] sm:$0xff] %vm2036_vm9, %v3319_v32  ;;  %2426 = vst.msk [vmem:[%s4620_s7 + $0x70] sm:$0xff] %vm2036_vm9, %v3319_v32 }
 0x793   : > { %1982 = vperm.xlu1 %3268, %v1928_v47   ;;  %1977 = vperm.xlu0 %3267, %v1927_v48  }
 0x797   : > { %1992 = vperm.xlu1 %3268, %v1930_v49   ;;  %1987 = vperm.xlu0 %3267, %v1929_v50  }
 0x79b   : > { %2002 = vperm.xlu1 %3268, %v1932_v55   ;;  %1997 = vperm.xlu0 %3267, %v1931_v56  }
 0x79f   : > { %2012 = vperm.xlu1 %3268, %v1934_v58   ;;  %2007 = vperm.xlu0 %3267, %v1933_v59  }
 0x802   : > { %v1948_v62 = vpop.permute.xlu1 %1947  ;;  %v1938_v24 = vpop.permute.xlu0 %1937 }
 0x803   : > { %v2015_v0 = vmul.f32 %v1938_v24, %v4183_v34  ;;  %v2017_v1 = vmul.f32 %v1948_v62, %v4173_v26 }
 0x805   : > { %3083 = vmatprep.mubr.msk.f32.mxu0 %vm2036_vm9, %v2015_v0  ;;  %3115 = vmatprep.mubr.msk.f32.mxu1 %vm2036_vm9, %v2015_v0 }
 0x806   : > { %v1953_v6 = vpop.permute.xlu1 %1952  ;;  %v1943_v7 = vpop.permute.xlu0 %1942 }
 0x807   : > { %v2016_v28 = vmul.f32 %v1943_v7, %v1904_v41  ;;  %v2018_v13 = vmul.f32 %v1953_v6, %v4205_v38 }
 0x809   : > { %3084 = vmatmul.mubr.msk.f32.vlgmr.msra.gmra.mrb[0].mxu0 %vm2036_vm9, %v2016_v28  ;;  %3116 = vmatmul.mubr.msk.f32.vlgmr.msra.gmra.mrb[0].mxu1 %vm2036_vm9, %v2016_v28 }
 0x80a   : > { %v1963_v8 = vpop.permute.xlu1 %1962  ;;  %v1958_v11 = vpop.permute.xlu0 %1957  ;;  %3086 = vmatprep.mubr.msk.f32.mxu0 %vm2036_vm9, %v2017_v1  ;;  %3118 = vmatprep.mubr.msk.f32.mxu1 %vm2036_vm9, %v2017_v1 }
 0x80b   : > { %v2019_v2 = vmul.f32 %v1958_v11, %v4223_v51  ;;  %v2020_v5 = vmul.f32 %v1963_v8, %v4218_v45 }
 0x80d   : > { %3087 = vmatmul.mubr.msk.f32.gmra.mrb[2].mxu0 %vm2036_vm9, %v2018_v13  ;;  %3119 = vmatmul.mubr.msk.f32.gmra.mrb[2].mxu1 %vm2036_vm9, %v2018_v13 }
 0x80e   : > { %v1973_v3 = vpop.permute.xlu1 %1972  ;;  %v1968_v4 = vpop.permute.xlu0 %1967  ;;  %3089 = vmatprep.mubr.msk.f32.mxu0 %vm2036_vm9, %v2019_v2  ;;  %3121 = vmatprep.mubr.msk.f32.mxu1 %vm2036_vm9, %v2019_v2 }
 0x80f   : > { %v2021_v14 = vmul.f32 %v1968_v4, %v1909_v46  ;;  %v2022_v17 = vmul.f32 %v1973_v3, %v4249_v44 }
 0x811   : > { %3090 = vmatmul.mubr.msk.f32.gmra.mrb[4].mxu0 %vm2036_vm9, %v2020_v5  ;;  %3122 = vmatmul.mubr.msk.f32.gmra.mrb[4].mxu1 %vm2036_vm9, %v2020_v5 }
 0x812   : > { %v1983_v9 = vpop.permute.xlu1 %1982  ;;  %v1978_v15 = vpop.permute.xlu0 %1977  ;;  %3092 = vmatprep.mubr.msk.f32.mxu0 %vm2036_vm9, %v2021_v14  ;;  %3124 = vmatprep.mubr.msk.f32.mxu1 %vm2036_vm9, %v2021_v14 }
 0x813   : > { %v2023_v12 = vmul.f32 %v1978_v15, %v1911_v63  ;;  %v2024_v19 = vmul.f32 %v1983_v9, %v4273_v57 }
 0x815   : > { %3093 = vmatmul.mubr.msk.f32.gmra.mrb[6].mxu0 %vm2036_vm9, %v2022_v17  ;;  %3125 = vmatmul.mubr.msk.f32.gmra.mrb[6].mxu1 %vm2036_vm9, %v2022_v17 }
 0x816   : > { %v1993_v18 = vpop.permute.xlu1 %1992  ;;  %v1988_v16 = vpop.permute.xlu0 %1987  ;;  %3095 = vmatprep.mubr.msk.f32.mxu0 %vm2036_vm9, %v2023_v12  ;;  %3127 = vmatprep.mubr.msk.f32.mxu1 %vm2036_vm9, %v2023_v12 }
 0x817   : > { %v2025_v20 = vmul.f32 %v1988_v16, %v1913_v53  ;;  %v2026_v25 = vmul.f32 %v1993_v18, %v4297_v52 }
 0x819   : > { %3096 = vmatmul.mubr.msk.f32.gmra.mrb[8].mxu0 %vm2036_vm9, %v2024_v19  ;;  %3128 = vmatmul.mubr.msk.f32.gmra.mrb[8].mxu1 %vm2036_vm9, %v2024_v19 }
 0x81a   : > { %v2003_v22 = vpop.permute.xlu1 %2002  ;;  %v1998_v23 = vpop.permute.xlu0 %1997  ;;  %3098 = vmatprep.mubr.msk.f32.mxu0 %vm2036_vm9, %v2025_v20  ;;  %3130 = vmatprep.mubr.msk.f32.mxu1 %vm2036_vm9, %v2025_v20 }
 0x81b   : > { %v2027_v27 = vmul.f32 %v1998_v23, %v1915_v54  ;;  %v2028_v21 = vmul.f32 %v2003_v22, %v4321_v10 }
 0x81d   : > { %3099 = vmatmul.mubr.msk.f32.gmra.mrb[10].mxu0 %vm2036_vm9, %v2026_v25  ;;  %3131 = vmatmul.mubr.msk.f32.gmra.mrb[10].mxu1 %vm2036_vm9, %v2026_v25 }
 0x81e   : > { %v2008_v29 = vpop.permute.xlu0 %2007  ;;  %3101 = vmatprep.mubr.msk.f32.mxu0 %vm2036_vm9, %v2027_v27  ;;  %3133 = vmatprep.mubr.msk.f32.mxu1 %vm2036_vm9, %v2027_v27  ;;  %v2013_v26 = vpop.permute.xlu1 %2012 }
 0x81f   : > { %v2029_v30 = vmul.f32 %v2008_v29, %v1917_v61  ;;  %v2030_v31 = vmul.f32 %v2013_v26, %v4345_v60 }
 0x821   : > { %3102 = vmatmul.mubr.msk.f32.gmra.mrb[12].mxu0 %vm2036_vm9, %v2028_v21  ;;  %3134 = vmatmul.mubr.msk.f32.gmra.mrb[12].mxu1 %vm2036_vm9, %v2028_v21 }
 0x822   : > { %3104 = vmatprep.mubr.msk.f32.mxu0 %vm2036_vm9, %v2029_v30  ;;  %3136 = vmatprep.mubr.msk.f32.mxu1 %vm2036_vm9, %v2029_v30 }
 0x825   : > { %3105 = vmatmul.mubr.msk.f32.gmra.mrb[14].mxu0 %vm2036_vm9, %v2030_v31  ;;  %3137 = vmatmul.mubr.msk.f32.gmra.mrb[14].mxu1 %vm2036_vm9, %v2030_v31 }
 0x8dc   : > { %v3085_v32 = vpop.f32.mrb[0].mxu0  ;;  %v3117_v34 = vpop.f32.mrb[0].mxu1 }
 0x8dd   : > { %2231 = vst.msk [vmem:[#allocation2 + $0x8] sm:$0xff] %vm2036_vm9, %v3085_v32  ;;  %2397 = vst.msk [vmem:[#allocation2 + $0x88] sm:$0xff] %vm2036_vm9, %v3117_v34  ;;  %v2151_v33 = vpop.f32.mrb[1].mxu0  ;;  %v2317_v39 = vpop.f32.mrb[1].mxu1 }
 0x8de   : > { %2230 = vst.msk [vmem:[#allocation2] sm:$0xff] %vm2036_vm9, %v2151_v33  ;;  %2396 = vst.msk [vmem:[#allocation2 + $0x80] sm:$0xff] %vm2036_vm9, %v2317_v39 }
 0x8e0   : > { %v3088_v35 = vpop.f32.mrb[2].mxu0  ;;  %v3120_v36 = vpop.f32.mrb[2].mxu1 }
 0x8e1   : > { %2233 = vst.msk [vmem:[#allocation2 + $0x18] sm:$0xff] %vm2036_vm9, %v3088_v35  ;;  %2399 = vst.msk [vmem:[#allocation2 + $0x98] sm:$0xff] %vm2036_vm9, %v3120_v36  ;;  %v2161_v37 = vpop.f32.mrb[3].mxu0  ;;  %v2327_v38 = vpop.f32.mrb[3].mxu1 }
 0x8e2   : > { %2232 = vst.msk [vmem:[#allocation2 + $0x10] sm:$0xff] %vm2036_vm9, %v2161_v37  ;;  %2398 = vst.msk [vmem:[#allocation2 + $0x90] sm:$0xff] %vm2036_vm9, %v2327_v38 }
 0x8e4   : > { %v3091_v40 = vpop.f32.mrb[4].mxu0  ;;  %v3123_v41 = vpop.f32.mrb[4].mxu1 }
 0x8e5   : > { %2235 = vst.msk [vmem:[#allocation2 + $0x28] sm:$0xff] %vm2036_vm9, %v3091_v40  ;;  %2401 = vst.msk [vmem:[#allocation2 + $0xa8] sm:$0xff] %vm2036_vm9, %v3123_v41  ;;  %v2171_v45 = vpop.f32.mrb[5].mxu0  ;;  %v2337_v51 = vpop.f32.mrb[5].mxu1 }
 0x8e6   : > { %2234 = vst.msk [vmem:[#allocation2 + $0x20] sm:$0xff] %vm2036_vm9, %v2171_v45  ;;  %2400 = vst.msk [vmem:[#allocation2 + $0xa0] sm:$0xff] %vm2036_vm9, %v2337_v51 }
 0x8e8   : > { %v3094_v42 = vpop.f32.mrb[6].mxu0  ;;  %v3126_v43 = vpop.f32.mrb[6].mxu1 }
 0x8e9   : > { %2237 = vst.msk [vmem:[#allocation2 + $0x38] sm:$0xff] %vm2036_vm9, %v3094_v42  ;;  %2403 = vst.msk [vmem:[#allocation2 + $0xb8] sm:$0xff] %vm2036_vm9, %v3126_v43  ;;  %v2181_v44 = vpop.f32.mrb[7].mxu0  ;;  %v2347_v46 = vpop.f32.mrb[7].mxu1 }
 0x8ea   : > { %2236 = vst.msk [vmem:[#allocation2 + $0x30] sm:$0xff] %vm2036_vm9, %v2181_v44  ;;  %2402 = vst.msk [vmem:[#allocation2 + $0xb0] sm:$0xff] %vm2036_vm9, %v2347_v46 }
 0x8ec   : > { %v3097_v47 = vpop.f32.mrb[8].mxu0  ;;  %v3129_v48 = vpop.f32.mrb[8].mxu1 }
 0x8ed   : > { %2239 = vst.msk [vmem:[#allocation2 + $0x48] sm:$0xff] %vm2036_vm9, %v3097_v47  ;;  %2405 = vst.msk [vmem:[#allocation2 + $0xc8] sm:$0xff] %vm2036_vm9, %v3129_v48  ;;  %v2191_v57 = vpop.f32.mrb[9].mxu0  ;;  %v2357_v63 = vpop.f32.mrb[9].mxu1 }
 0x8ee   : > { %2238 = vst.msk [vmem:[#allocation2 + $0x40] sm:$0xff] %vm2036_vm9, %v2191_v57  ;;  %2404 = vst.msk [vmem:[#allocation2 + $0xc0] sm:$0xff] %vm2036_vm9, %v2357_v63 }
 0x8f0   : > { %v3100_v49 = vpop.f32.mrb[10].mxu0  ;;  %v3132_v50 = vpop.f32.mrb[10].mxu1 }
 0x8f1   : > { %2241 = vst.msk [vmem:[#allocation2 + $0x58] sm:$0xff] %vm2036_vm9, %v3100_v49  ;;  %2407 = vst.msk [vmem:[#allocation2 + $0xd8] sm:$0xff] %vm2036_vm9, %v3132_v50  ;;  %v2201_v52 = vpop.f32.mrb[11].mxu0  ;;  %v2367_v53 = vpop.f32.mrb[11].mxu1 }
 0x8f2   : > { %2240 = vst.msk [vmem:[#allocation2 + $0x50] sm:$0xff] %vm2036_vm9, %v2201_v52  ;;  %2406 = vst.msk [vmem:[#allocation2 + $0xd0] sm:$0xff] %vm2036_vm9, %v2367_v53 }
 0x8f4   : > { %v3103_v55 = vpop.f32.mrb[12].mxu0  ;;  %v3135_v56 = vpop.f32.mrb[12].mxu1 }
 0x8f5   : > { %2243 = vst.msk [vmem:[#allocation2 + $0x68] sm:$0xff] %vm2036_vm9, %v3103_v55  ;;  %2409 = vst.msk [vmem:[#allocation2 + $0xe8] sm:$0xff] %vm2036_vm9, %v3135_v56  ;;  %v2211_v10 = vpop.f32.mrb[13].mxu0  ;;  %v2377_v54 = vpop.f32.mrb[13].mxu1 }
 0x8f6   : > { %2242 = vst.msk [vmem:[#allocation2 + $0x60] sm:$0xff] %vm2036_vm9, %v2211_v10  ;;  %2408 = vst.msk [vmem:[#allocation2 + $0xe0] sm:$0xff] %vm2036_vm9, %v2377_v54 }
 0x8f8   : > { %v3106_v58 = vpop.f32.mrb[14].mxu0  ;;  %v3138_v59 = vpop.f32.mrb[14].mxu1 }
 0x8f9   : > { %2245 = vst.msk [vmem:[#allocation2 + $0x78] sm:$0xff] %vm2036_vm9, %v3106_v58  ;;  %2411 = vst.msk [vmem:[#allocation2 + $0xf8] sm:$0xff] %vm2036_vm9, %v3138_v59  ;;  %v2221_v60 = vpop.f32.mrb[15].mxu0  ;;  %v2387_v61 = vpop.f32.mrb[15].mxu1 }
 0x8fa   : > { %2244 = vst.msk [vmem:[#allocation2 + $0x70] sm:$0xff] %vm2036_vm9, %v2221_v60  ;;  %2410 = vst.msk [vmem:[#allocation2 + $0xf0] sm:$0xff] %vm2036_vm9, %v2387_v61 }
 0x8fb PF: > { %p2428_p0 = pnand %p1898_p12, %p1436_p10 }
 0x8fc   : > { %v2450_v62 = vld [vmem:[%s4615_s2 + $0x10] sm:$0xff] (!%p2428_p0)  ;;  %v2448_v24 = vld [vmem:[%s4615_s2] sm:$0xff] (!%p2428_p0)  ;;  %v3320_v0 = vmov (!%p2428_p0), 0   ;;  %v2451_v1 = vld [vmem:[%s4615_s2 + $0x18] sm:$0xff] (!%p2428_p0)  ;;  %vm2560_vm10 = vcmask (!%p2428_p0), 261120  }
 0x8fd   : > { %2431 = sbr.rel (%p2428_p0) target bundleno = 2461 (0x99d), region = 68  ;;  %3270 = vset.pattern.permute.xlu1 (!%p2428_p0), %v3320_v0  ;;  %3269 = vset.pattern.permute.xlu0 (!%p2428_p0), %v3320_v0  ;;  %v2449_v6 = vld [vmem:[%s4615_s2 + $0x8] sm:$0xff] (!%p2428_p0)  ;;  %v2452_v28 = vld [vmem:[%s4615_s2 + $0x20] sm:$0xff] (!%p2428_p0)  ;;  %v2455_v8 = vld [vmem:[%s4615_s2 + $0x38] sm:$0xff] (!%p2428_p0) }
 0x8fe   : > { %2476 = vperm.xlu1 (!%p2428_p0), %3270, %v2450_v62   ;;  %2466 = vperm.xlu0 (!%p2428_p0), %3269, %v2448_v24   ;;  %v2453_v7 = vld [vmem:[%s4615_s2 + $0x28] sm:$0xff] (!%p2428_p0)  ;;  %v2454_v11 = vld [vmem:[%s4615_s2 + $0x30] sm:$0xff] (!%p2428_p0)  ;;  %v2456_v2 = vld [vmem:[%s4615_s2 + $0x40] sm:$0xff] (!%p2428_p0) }
 0x8ff   : > { %v2457_v13 = vld [vmem:[%s4615_s2 + $0x48] sm:$0xff] (!%p2428_p0)  ;;  %v2459_v3 = vld [vmem:[%s4615_s2 + $0x58] sm:$0xff] (!%p2428_p0)  ;;  %v2458_v4 = vld [vmem:[%s4615_s2 + $0x50] sm:$0xff] (!%p2428_p0) }
 0x900   : > { %v2461_v5 = vld [vmem:[%s4615_s2 + $0x68] sm:$0xff] (!%p2428_p0)  ;;  %v2460_v14 = vld [vmem:[%s4615_s2 + $0x60] sm:$0xff] (!%p2428_p0)  ;;  %v2463_v9 = vld [vmem:[%s4615_s2 + $0x78] sm:$0xff] (!%p2428_p0) }
 0x901   : > { %v2462_v15 = vld [vmem:[%s4615_s2 + $0x70] sm:$0xff] (!%p2428_p0)  ;;  %v2432_v12 = vld [vmem:[%s4620_s7] sm:$0xff] (!%p2428_p0)  ;;  %v2435_v22 = vld [vmem:[%s4620_s7 + $0x18] sm:$0xff] (!%p2428_p0) }
 0x902   : > { %2481 = vperm.xlu1 (!%p2428_p0), %3270, %v2451_v1   ;;  %2471 = vperm.xlu0 (!%p2428_p0), %3269, %v2449_v6   ;;  %v2434_v17 = vld [vmem:[%s4620_s7 + $0x10] sm:$0xff] (!%p2428_p0)  ;;  %v2433_v23 = vld [vmem:[%s4620_s7 + $0x8] sm:$0xff] (!%p2428_p0)  ;;  %v2436_v26 = vld [vmem:[%s4620_s7 + $0x20] sm:$0xff] (!%p2428_p0) }
 0x903   : > { %v2437_v30 = vld [vmem:[%s4620_s7 + $0x28] sm:$0xff] (!%p2428_p0)  ;;  %v2439_v39 = vld [vmem:[%s4620_s7 + $0x38] sm:$0xff] (!%p2428_p0)  ;;  %v2438_v35 = vld [vmem:[%s4620_s7 + $0x30] sm:$0xff] (!%p2428_p0) }
 0x904   : > { %v2441_v41 = vld [vmem:[%s4620_s7 + $0x48] sm:$0xff]  ;;  %v2440_v45 = vld [vmem:[%s4620_s7 + $0x40] sm:$0xff]  ;;  %v2443_v46 = vld [vmem:[%s4620_s7 + $0x58] sm:$0xff] }
 0x905   : > { %v2442_v47 = vld [vmem:[%s4620_s7 + $0x50] sm:$0xff]  ;;  %v2445_v50 = vld [vmem:[%s4620_s7 + $0x68] sm:$0xff]  ;;  %v2444_v52 = vld [vmem:[%s4620_s7 + $0x60] sm:$0xff] }
 0x906   : > { %2491 = vperm.xlu1 %3270, %v2453_v7   ;;  %2486 = vperm.xlu0 %3269, %v2452_v28   ;;  %v2447_v54 = vld [vmem:[%s4620_s7 + $0x78] sm:$0xff]  ;;  %v2446_v58 = vld [vmem:[%s4620_s7 + $0x70] sm:$0xff] }
 0x90a   : > { %2501 = vperm.xlu1 %3270, %v2455_v8   ;;  %2496 = vperm.xlu0 %3269, %v2454_v11  }
 0x90e   : > { %2511 = vperm.xlu1 %3270, %v2457_v13   ;;  %2506 = vperm.xlu0 %3269, %v2456_v2  }
 0x912   : > { %2521 = vperm.xlu1 %3270, %v2459_v3   ;;  %2516 = vperm.xlu0 %3269, %v2458_v4  }
 0x916   : > { %2531 = vperm.xlu1 %3270, %v2461_v5   ;;  %2526 = vperm.xlu0 %3269, %v2460_v14  }
 0x91a   : > { %2541 = vperm.xlu1 %3270, %v2463_v9   ;;  %2536 = vperm.xlu0 %3269, %v2462_v15  }
 0x97d   : > { %v2477_v18 = vpop.permute.xlu1 %2476  ;;  %v2467_v16 = vpop.permute.xlu0 %2466 }
 0x97e   : > { %v2546_v19 = vmul.f32 %v2477_v18, %v2434_v17  ;;  %v2544_v20 = vmul.f32 %v2467_v16, %v2432_v12 }
 0x980   : > { %2563 = vst.msk [vmem:[%s4620_s7 + $0x10] sm:$0xff] %vm2560_vm10, %v2546_v19  ;;  %2561 = vst.msk [vmem:[%s4620_s7] sm:$0xff] %vm2560_vm10, %v2544_v20 }
 0x981   : > { %v2482_v25 = vpop.permute.xlu1 %2481  ;;  %v2472_v27 = vpop.permute.xlu0 %2471 }
 0x982   : > { %v2547_v29 = vmul.f32 %v2482_v25, %v2435_v22  ;;  %v2545_v21 = vmul.f32 %v2472_v27, %v2433_v23 }
 0x984   : > { %2564 = vst.msk [vmem:[%s4620_s7 + $0x18] sm:$0xff] %vm2560_vm10, %v2547_v29  ;;  %2562 = vst.msk [vmem:[%s4620_s7 + $0x8] sm:$0xff] %vm2560_vm10, %v2545_v21 }
 0x985   : > { %v2492_v31 = vpop.permute.xlu1 %2491  ;;  %v2487_v32 = vpop.permute.xlu0 %2486 }
 0x986   : > { %v2549_v34 = vmul.f32 %v2492_v31, %v2437_v30  ;;  %v2548_v33 = vmul.f32 %v2487_v32, %v2436_v26 }
 0x988   : > { %2566 = vst.msk [vmem:[%s4620_s7 + $0x28] sm:$0xff] %vm2560_vm10, %v2549_v34  ;;  %2565 = vst.msk [vmem:[%s4620_s7 + $0x20] sm:$0xff] %vm2560_vm10, %v2548_v33 }
 0x989   : > { %v2502_v36 = vpop.permute.xlu1 %2501  ;;  %v2497_v37 = vpop.permute.xlu0 %2496 }
 0x98a   : > { %v2551_v38 = vmul.f32 %v2502_v36, %v2439_v39  ;;  %v2550_v40 = vmul.f32 %v2497_v37, %v2438_v35 }
 0x98c   : > { %2568 = vst.msk [vmem:[%s4620_s7 + $0x38] sm:$0xff] %vm2560_vm10, %v2551_v38  ;;  %2567 = vst.msk [vmem:[%s4620_s7 + $0x30] sm:$0xff] %vm2560_vm10, %v2550_v40 }
 0x98d   : > { %v2512_v51 = vpop.permute.xlu1 %2511  ;;  %v2507_v42 = vpop.permute.xlu0 %2506 }
 0x98e   : > { %v2553_v43 = vmul.f32 %v2512_v51, %v2441_v41  ;;  %v2552_v44 = vmul.f32 %v2507_v42, %v2440_v45 }
 0x990   : > { %2570 = vst.msk [vmem:[%s4620_s7 + $0x48] sm:$0xff] %vm2560_vm10, %v2553_v43  ;;  %2569 = vst.msk [vmem:[%s4620_s7 + $0x40] sm:$0xff] %vm2560_vm10, %v2552_v44 }
 0x991   : > { %v2522_v48 = vpop.permute.xlu1 %2521  ;;  %v2517_v57 = vpop.permute.xlu0 %2516 }
 0x992   : > { %v2555_v63 = vmul.f32 %v2522_v48, %v2443_v46  ;;  %v2554_v49 = vmul.f32 %v2517_v57, %v2442_v47 }
 0x994   : > { %2572 = vst.msk [vmem:[%s4620_s7 + $0x58] sm:$0xff] %vm2560_vm10, %v2555_v63  ;;  %2571 = vst.msk [vmem:[%s4620_s7 + $0x50] sm:$0xff] %vm2560_vm10, %v2554_v49 }
 0x995   : > { %v2532_v53 = vpop.permute.xlu1 %2531  ;;  %v2527_v55 = vpop.permute.xlu0 %2526 }
 0x996   : > { %v2557_v56 = vmul.f32 %v2532_v53, %v2445_v50  ;;  %v2556_v10 = vmul.f32 %v2527_v55, %v2444_v52 }
 0x998   : > { %2574 = vst.msk [vmem:[%s4620_s7 + $0x68] sm:$0xff] %vm2560_vm10, %v2557_v56  ;;  %2573 = vst.msk [vmem:[%s4620_s7 + $0x60] sm:$0xff] %vm2560_vm10, %v2556_v10 }
 0x999   : > { %v2542_v59 = vpop.permute.xlu1 %2541  ;;  %v2537_v60 = vpop.permute.xlu0 %2536 }
 0x99a   : > { %v2559_v61 = vmul.f32 %v2542_v59, %v2447_v54  ;;  %v2558_v62 = vmul.f32 %v2537_v60, %v2446_v58 }
 0x99c   : > { %2576 = vst.msk [vmem:[%s4620_s7 + $0x78] sm:$0xff] %vm2560_vm10, %v2559_v61  ;;  %2575 = vst.msk [vmem:[%s4620_s7 + $0x70] sm:$0xff] %vm2560_vm10, %v2558_v62 }
 0x99d PF: > { %s17_s28 = sadd.s32 1, %s3309_s28   ;;  %s4621_s24 = smov %s3301_s26 }
 0x99e   : > { %p14_p1 = scmp.ge.s32.totalorder %s17_s28, 6   ;;  %s4622_s25 = smov %s3305_s27 }
 0x99f   : > { %s4623_s26 = smov %s4626_s29  ;;  %s4624_s27 = smov %s4630_s30 }
 0x9a0   :  { %16 = sbr.rel (!%p14_p1) target bundleno = 3 (0x3), region = 106 }

</bundles_post_ra>
